<compile_context>
chip_gen: v7x
topology: tpu7x:2x2x1
jax: 0.10.0
libtpu: 0.0.40
codegen_flags: <defaults>
</compile_context>

<pallas_src>
import functools

import jax
import jax.numpy as jnp
from jax import lax
from jax.experimental import pallas as pl
from jax.experimental.pallas import tpu as pltpu
import numpy as np


# ----------------------------------------------------------------------------
# Kernel: full transformer (all layers) for one block of batch elements.
#   x = LN1(x + MHA(x))            (MHA: bias-free in/out projections)
#   x = LN2(x + W2 gelu(W1 x + b1) + b2)
# ----------------------------------------------------------------------------
def transformer_kernel(x_ref, w_in_ref, w_out_ref, g1_ref, beta1_ref,
                       w1_ref, b1_ref, w2_ref, b2_ref, g2_ref, beta2_ref,
                       o_ref, attn_ref, *, num_layers, nheads, head_dim,
                       batch_in_block, seq_len):
    d_model = nheads * head_dim
    rows = batch_in_block * seq_len
    scale = 1.0 / float(head_dim) ** 0.5
    eps = 1e-5

    x = x_ref[...].astype(jnp.float32)            # (rows, D), resident all layers

    for l in range(num_layers):                   # static unroll over layers
        # ---- self-attention block ------------------------------------------
        # fused QKV projection: one MXU pass against pre-transposed (D, 3D)
        qkv = jnp.dot(x, w_in_ref[l], preferred_element_type=jnp.float32)
        q = qkv[:, :d_model].reshape(batch_in_block, seq_len, d_model)
        k = qkv[:, d_model:2 * d_model].reshape(batch_in_block, seq_len, d_model)
        v = qkv[:, 2 * d_model:].reshape(batch_in_block, seq_len, d_model)

        for h in range(nheads):                   # static unroll, batched over B
            sl = slice(h * head_dim, (h + 1) * head_dim)
            qh, kh, vh = q[..., sl], k[..., sl], v[..., sl]
            s = jnp.einsum("bqd,bkd->bqk", qh, kh,
                           preferred_element_type=jnp.float32) * scale
            s = s - jnp.max(s, axis=-1, keepdims=True)
            p = jnp.exp(s)
            # softmax denominator on the EUP (approx reciprocal), frees VALU
            p = p * pl.reciprocal(jnp.sum(p, axis=-1, keepdims=True), approx=True)
            # scatter head output into the VMEM slab (no jnp.concatenate)
            attn_ref[:, :, sl] = jnp.einsum("bqk,bkd->bqd", p, vh,
                                            preferred_element_type=jnp.float32)

        attn = attn_ref[...].reshape(rows, d_model)
        attn = jnp.dot(attn, w_out_ref[l], preferred_element_type=jnp.float32)

        # residual + LayerNorm1 (eps = 1e-5, nn.LayerNorm default)
        x1 = x + attn
        mu1 = jnp.mean(x1, axis=-1, keepdims=True)
        var1 = jnp.mean((x1 - mu1) ** 2, axis=-1, keepdims=True)
        x1n = (x1 - mu1) * lax.rsqrt(var1 + eps) * g1_ref[l] + beta1_ref[l]

        # ---- feed-forward block: exact (erf) GELU, matching F.gelu ----------
        h1 = jnp.dot(x1n, w1_ref[l], preferred_element_type=jnp.float32) + b1_ref[l]
        h1 = 0.5 * h1 * (1.0 + lax.erf(h1 * 0.7071067811865476))
        y = jnp.dot(h1, w2_ref[l], preferred_element_type=jnp.float32) + b2_ref[l]

        # residual + LayerNorm2
        x2 = x1n + y
        mu2 = jnp.mean(x2, axis=-1, keepdims=True)
        var2 = jnp.mean((x2 - mu2) ** 2, axis=-1, keepdims=True)
        x = (x2 - mu2) * lax.rsqrt(var2 + eps) * g2_ref[l] + beta2_ref[l]

    o_ref[...] = x.astype(o_ref.dtype)


def my_transformer_pallas(x, layer_params, nheads, *, batch_block=None):
    """x: (B, S, D).  batch_block=None -> whole batch in one grid step.
    On v7x set batch_block=B//2 to split work across both TensorCores."""
    B, S, D = x.shape
    L = len(layer_params)
    ffn = layer_params[0]["w1"].shape[0]
    head_dim = D // nheads
    bb = B if batch_block is None else batch_block
    assert B % bb == 0
    rows = bb * S

    # Stack per-layer weights with a leading layer axis; pre-transpose matmul
    # weights host-side so the kernel computes x @ W_T with no in-kernel .T.
    stack = lambda name: jnp.stack([p[name] for p in layer_params])
    w_in_T = jnp.stack([p["w_in"].T for p in layer_params])    # (L, D, 3D)
    w_out_T = jnp.stack([p["w_out"].T for p in layer_params])  # (L, D, D)
    w1_T = jnp.stack([p["w1"].T for p in layer_params])        # (L, D, F)
    w2_T = jnp.stack([p["w2"].T for p in layer_params])        # (L, F, D)
    g1, beta1 = stack("g1"), stack("beta1")                    # (L, 1, D)
    g2, beta2 = stack("g2"), stack("beta2")                    # (L, 1, D)
    b1, b2 = stack("b1"), stack("b2")                          # (L,1,F),(L,1,D)

    x2d = x.reshape(B * S, D)   # fold batch into the row (sublane) dimension

    def full_spec(shape):
        return pl.BlockSpec(shape, lambda i: (0,) * len(shape))

    kernel = functools.partial(
        transformer_kernel, num_layers=L, nheads=nheads, head_dim=head_dim,
        batch_in_block=bb, seq_len=S)

    out2d = pl.pallas_call(
        kernel,
        out_shape=jax.ShapeDtypeStruct((B * S, D), x.dtype),
        grid=(B // bb,),
        in_specs=[
            pl.BlockSpec((rows, D), lambda i: (i, 0)),        # activations
            full_spec((L, D, 3 * D)),                         # qkv in_proj (pre-T)
            full_spec((L, D, D)),                             # out_proj (pre-T)
            full_spec((L, 1, D)), full_spec((L, 1, D)),       # norm1 gamma/beta
            full_spec((L, D, ffn)), full_spec((L, 1, ffn)),   # linear1 w(pre-T)/b
            full_spec((L, ffn, D)), full_spec((L, 1, D)),     # linear2 w(pre-T)/b
            full_spec((L, 1, D)), full_spec((L, 1, D)),       # norm2 gamma/beta
        ],
        out_specs=pl.BlockSpec((rows, D), lambda i: (i, 0)),
        scratch_shapes=[pltpu.VMEM((bb, S, D), jnp.float32)],  # per-head slab
        compiler_params=pltpu.CompilerParams(
            dimension_semantics=("parallel",)),
    )(x2d, w_in_T, w_out_T, g1, beta1, w1_T, b1, w2_T, b2, g2, beta2)
    return out2d.reshape(B, S, D)


# ----------------------------------------------------------------------------
# Pure-JAX reference (same math, PyTorch eval semantics) for correctness check.
# ----------------------------------------------------------------------------
def encoder_layer_ref(x, p, nheads):
    B, S, D = x.shape
    hd = D // nheads
    qkv = jnp.einsum("bsd,ed->bse", x, p["w_in"])          # (B,S,3D)
    q, k, v = qkv[..., :D], qkv[..., D:2 * D], qkv[..., 2 * D:]

    def split(t):
        return t.reshape(B, S, nheads, hd).transpose(0, 2, 1, 3)

    q, k, v = split(q), split(k), split(v)
    s = jnp.einsum("bhqd,bhkd->bhqk", q, k) / jnp.sqrt(float(hd))
    a = jax.nn.softmax(s, axis=-1)
    o = jnp.einsum("bhqk,bhkd->bhqd", a, v).transpose(0, 2, 1, 3).reshape(B, S, D)
    o = jnp.einsum("bsd,ed->bse", o, p["w_out"])

    def ln(t, g, b):
        mu = jnp.mean(t, -1, keepdims=True)
        var = jnp.mean((t - mu) ** 2, -1, keepdims=True)
        return (t - mu) / jnp.sqrt(var + 1e-5) * g + b

    x1 = ln(x + o, p["g1"], p["beta1"])
    h = jnp.einsum("bsd,fd->bsf", x1, p["w1"]) + p["b1"]
    h = 0.5 * h * (1.0 + lax.erf(h / jnp.sqrt(2.0)))
    y = jnp.einsum("bsf,df->bsd", h, p["w2"]) + p["b2"]
    return ln(x1 + y, p["g2"], p["beta2"])


def my_transformer_ref(x, layer_params, nheads):
    for p in layer_params:
        x = encoder_layer_ref(x, p, nheads)
    return x


# ----------------------------------------------------------------------------
def init_layer_params(key, d_model, dim_feedforward):
    ks = jax.random.split(key, 8)
    s = 0.05
    return {
        # nn.MultiheadAttention(..., bias=False): no in_proj / out_proj bias
        "w_in": s * jax.random.normal(ks[0], (3 * d_model, d_model), jnp.float32),
        "w_out": s * jax.random.normal(ks[1], (d_model, d_model), jnp.float32),
        "g1": 1.0 + s * jax.random.normal(ks[2], (1, d_model), jnp.float32),
        "beta1": s * jax.random.normal(ks[3], (1, d_model), jnp.float32),
        "w1": s * jax.random.normal(ks[4], (dim_feedforward, d_model), jnp.float32),
        "b1": s * jax.random.normal(ks[5], (1, dim_feedforward), jnp.float32),
        "w2": s * jax.random.normal(ks[6], (d_model, dim_feedforward), jnp.float32),
        "b2": s * jax.random.normal(ks[7], (1, d_model), jnp.float32),
        "g2": jnp.ones((1, d_model), jnp.float32),
        "beta2": jnp.zeros((1, d_model), jnp.float32),
    }


if __name__ == "__main__":
    d_model, nheads, num_layers, dim_feedforward = 32, 4, 2, 64
    B, S = 2, 8

    root = jax.random.PRNGKey(0)
    xkey, *lkeys = jax.random.split(root, num_layers + 1)
    x = jax.random.normal(xkey, (B, S, d_model), jnp.float32)
    layer_params = [init_layer_params(k, d_model, dim_feedforward) for k in lkeys]

    out = my_transformer_pallas(x, layer_params, nheads)   # single pallas_call
    out = jax.block_until_ready(out)

    # Dropout layers are identity (inference) and masks are None in both paths.
    # Tolerance covers the approx (EUP) softmax reciprocal vs exact divide.
    ref = my_transformer_ref(x, layer_params, nheads)
    np.testing.assert_allclose(np.asarray(out), np.asarray(ref),
                               atol=2e-3, rtol=2e-3)
    print("KERNEL_OK")
</pallas_src>

<mosaic_0001>
module attributes {stable_mosaic.version = 11 : i64} {
  func.func @transformer_kernel(%arg0: i32, %arg1: memref<16x32xf32, #tpu.memory_space<vmem>>, %arg2: memref<2x32x96xf32, #tpu.memory_space<vmem>>, %arg3: memref<2x32x32xf32, #tpu.memory_space<vmem>>, %arg4: memref<2x1x32xf32, #tpu.memory_space<vmem>>, %arg5: memref<2x1x32xf32, #tpu.memory_space<vmem>>, %arg6: memref<2x32x64xf32, #tpu.memory_space<vmem>>, %arg7: memref<2x1x64xf32, #tpu.memory_space<vmem>>, %arg8: memref<2x64x32xf32, #tpu.memory_space<vmem>>, %arg9: memref<2x1x32xf32, #tpu.memory_space<vmem>>, %arg10: memref<2x1x32xf32, #tpu.memory_space<vmem>>, %arg11: memref<2x1x32xf32, #tpu.memory_space<vmem>>, %arg12: memref<16x32xf32, #tpu.memory_space<vmem>>, %arg13: memref<2x8x32xf32, #tpu.memory_space<vmem>>) attributes {dimension_semantics = [#tpu.dimension_semantics<parallel>], iteration_bounds = array<i64: 1>, scalar_prefetch = 0 : i64, scratch_operands = 1 : i64, tpu.core_type = #tpu.core_type<tc>, window_params = [{transform_indices = @transform_0, window_bounds = array<i64: 16, 32>}, {pipeline_mode = #tpu.pipeline_mode<synchronous>, transform_indices = @transform_1, window_bounds = array<i64: 2, 32, 96>}, {pipeline_mode = #tpu.pipeline_mode<synchronous>, transform_indices = @transform_2, window_bounds = array<i64: 2, 32, 32>}, {pipeline_mode = #tpu.pipeline_mode<synchronous>, transform_indices = @transform_3, window_bounds = array<i64: 2, 1, 32>}, {pipeline_mode = #tpu.pipeline_mode<synchronous>, transform_indices = @transform_4, window_bounds = array<i64: 2, 1, 32>}, {pipeline_mode = #tpu.pipeline_mode<synchronous>, transform_indices = @transform_5, window_bounds = array<i64: 2, 32, 64>}, {pipeline_mode = #tpu.pipeline_mode<synchronous>, transform_indices = @transform_6, window_bounds = array<i64: 2, 1, 64>}, {pipeline_mode = #tpu.pipeline_mode<synchronous>, transform_indices = @transform_7, window_bounds = array<i64: 2, 64, 32>}, {pipeline_mode = #tpu.pipeline_mode<synchronous>, transform_indices = @transform_8, window_bounds = array<i64: 2, 1, 32>}, {pipeline_mode = #tpu.pipeline_mode<synchronous>, transform_indices = @transform_9, window_bounds = array<i64: 2, 1, 32>}, {pipeline_mode = #tpu.pipeline_mode<synchronous>, transform_indices = @transform_10, window_bounds = array<i64: 2, 1, 32>}, {transform_indices = @transform_11, window_bounds = array<i64: 16, 32>}]} {
    %c0 = arith.constant 0 : index
    %c0_0 = arith.constant 0 : index
    %0 = vector.load %arg1[%c0, %c0_0] : memref<16x32xf32, #tpu.memory_space<vmem>>, vector<16x32xf32>
    %c0_1 = arith.constant 0 : index
    %c0_2 = arith.constant 0 : index
    %c0_3 = arith.constant 0 : index
    %1 = vector.load %arg2[%c0_1, %c0_2, %c0_3] : memref<2x32x96xf32, #tpu.memory_space<vmem>>, vector<1x32x96xf32>
    %2 = vector.shape_cast %1 : vector<1x32x96xf32> to vector<32x96xf32>
    %cst = arith.constant dense<0.000000e+00> : vector<16x96xf32>
    %3 = tpu.matmul %0, %2, %cst {dimension_numbers = #tpu.dot_dimension_numbers<[1], [0], [0], [1], [0, 0, 1, 1], [], []>} : vector<16x32xf32>, vector<32x96xf32>, vector<16x96xf32> -> vector<16x96xf32>
    %4 = vector.extract_strided_slice %3 {offsets = [0, 0], sizes = [16, 32], strides = [1, 1]} : vector<16x96xf32> to vector<16x32xf32>
    %5 = vector.shape_cast %4 : vector<16x32xf32> to vector<2x8x32xf32>
    %6 = vector.extract_strided_slice %3 {offsets = [0, 32], sizes = [16, 32], strides = [1, 1]} : vector<16x96xf32> to vector<16x32xf32>
    %7 = vector.shape_cast %6 : vector<16x32xf32> to vector<2x8x32xf32>
    %8 = vector.extract_strided_slice %3 {offsets = [0, 64], sizes = [16, 32], strides = [1, 1]} : vector<16x96xf32> to vector<16x32xf32>
    %9 = vector.shape_cast %8 : vector<16x32xf32> to vector<2x8x32xf32>
    %10 = vector.extract_strided_slice %5 {offsets = [0, 0, 0], sizes = [2, 8, 8], strides = [1, 1, 1]} : vector<2x8x32xf32> to vector<2x8x8xf32>
    %11 = vector.extract_strided_slice %7 {offsets = [0, 0, 0], sizes = [2, 8, 8], strides = [1, 1, 1]} : vector<2x8x32xf32> to vector<2x8x8xf32>
    %12 = vector.extract_strided_slice %9 {offsets = [0, 0, 0], sizes = [2, 8, 8], strides = [1, 1, 1]} : vector<2x8x32xf32> to vector<2x8x8xf32>
    "tpu.trace_start"() <{level = 10 : i32, message = "bqd,bkd->bqk"}> : () -> ()
    %cst_4 = arith.constant dense<0.000000e+00> : vector<2x8x8xf32>
    %13 = tpu.matmul %10, %11, %cst_4 {dimension_numbers = #tpu.dot_dimension_numbers<[2], [2], [1], [1], [0, 0, 0, 1, 1, 1], [0], [0]>} : vector<2x8x8xf32>, vector<2x8x8xf32>, vector<2x8x8xf32> -> vector<2x8x8xf32>
    "tpu.trace_stop"() : () -> ()
    %cst_5 = arith.constant 0.353553385 : f32
    %14 = vector.broadcast %cst_5 : f32 to vector<2x8x8xf32>
    %15 = arith.mulf %13, %14 : vector<2x8x8xf32>
    %cst_6 = arith.constant dense<0xFF800000> : vector<2x8xf32>
    %16 = vector.multi_reduction <maximumf>, %15, %cst_6 [2] : vector<2x8x8xf32> to vector<2x8xf32>
    %17 = vector.shape_cast %16 : vector<2x8xf32> to vector<2x8x1xf32>
    %18 = vector.broadcast %17 : vector<2x8x1xf32> to vector<2x8x8xf32>
    %19 = arith.subf %15, %18 : vector<2x8x8xf32>
    %20 = math.exp %19 : vector<2x8x8xf32>
    %cst_7 = arith.constant dense<0.000000e+00> : vector<2x8xf32>
    %21 = vector.multi_reduction <add>, %20, %cst_7 [2] : vector<2x8x8xf32> to vector<2x8xf32>
    %22 = vector.shape_cast %21 : vector<2x8xf32> to vector<2x8x1xf32>
    %23 = tpu.reciprocal %22 {approx = true} : vector<2x8x1xf32> -> vector<2x8x1xf32>
    %24 = vector.broadcast %23 : vector<2x8x1xf32> to vector<2x8x8xf32>
    %25 = arith.mulf %20, %24 : vector<2x8x8xf32>
    "tpu.trace_start"() <{level = 10 : i32, message = "bqk,bkd->bqd"}> : () -> ()
    %cst_8 = arith.constant dense<0.000000e+00> : vector<2x8x8xf32>
    %26 = tpu.matmul %25, %12, %cst_8 {dimension_numbers = #tpu.dot_dimension_numbers<[2], [1], [1], [2], [0, 0, 0, 1, 1, 2], [0], [0]>} : vector<2x8x8xf32>, vector<2x8x8xf32>, vector<2x8x8xf32> -> vector<2x8x8xf32>
    "tpu.trace_stop"() : () -> ()
    %c0_9 = arith.constant 0 : index
    %c0_10 = arith.constant 0 : index
    %c0_11 = arith.constant 0 : index
    %27 = vector.load %arg13[%c0_9, %c0_10, %c0_11] : memref<2x8x32xf32, #tpu.memory_space<vmem>>, vector<2x8x8xf32>
    tpu.vector_store %arg13[%c0_9, %c0_10, %c0_11], %26 {strides = array<i32>} : memref<2x8x32xf32, #tpu.memory_space<vmem>>, vector<2x8x8xf32>,
    %28 = vector.extract_strided_slice %5 {offsets = [0, 0, 8], sizes = [2, 8, 8], strides = [1, 1, 1]} : vector<2x8x32xf32> to vector<2x8x8xf32>
    %29 = vector.extract_strided_slice %7 {offsets = [0, 0, 8], sizes = [2, 8, 8], strides = [1, 1, 1]} : vector<2x8x32xf32> to vector<2x8x8xf32>
    %30 = vector.extract_strided_slice %9 {offsets = [0, 0, 8], sizes = [2, 8, 8], strides = [1, 1, 1]} : vector<2x8x32xf32> to vector<2x8x8xf32>
    "tpu.trace_start"() <{level = 10 : i32, message = "bqd,bkd->bqk"}> : () -> ()
    %cst_12 = arith.constant dense<0.000000e+00> : vector<2x8x8xf32>
    %31 = tpu.matmul %28, %29, %cst_12 {dimension_numbers = #tpu.dot_dimension_numbers<[2], [2], [1], [1], [0, 0, 0, 1, 1, 1], [0], [0]>} : vector<2x8x8xf32>, vector<2x8x8xf32>, vector<2x8x8xf32> -> vector<2x8x8xf32>
    "tpu.trace_stop"() : () -> ()
    %cst_13 = arith.constant 0.353553385 : f32
    %32 = vector.broadcast %cst_13 : f32 to vector<2x8x8xf32>
    %33 = arith.mulf %31, %32 : vector<2x8x8xf32>
    %cst_14 = arith.constant dense<0xFF800000> : vector<2x8xf32>
    %34 = vector.multi_reduction <maximumf>, %33, %cst_14 [2] : vector<2x8x8xf32> to vector<2x8xf32>
    %35 = vector.shape_cast %34 : vector<2x8xf32> to vector<2x8x1xf32>
    %36 = vector.broadcast %35 : vector<2x8x1xf32> to vector<2x8x8xf32>
    %37 = arith.subf %33, %36 : vector<2x8x8xf32>
    %38 = math.exp %37 : vector<2x8x8xf32>
    %cst_15 = arith.constant dense<0.000000e+00> : vector<2x8xf32>
    %39 = vector.multi_reduction <add>, %38, %cst_15 [2] : vector<2x8x8xf32> to vector<2x8xf32>
    %40 = vector.shape_cast %39 : vector<2x8xf32> to vector<2x8x1xf32>
    %41 = tpu.reciprocal %40 {approx = true} : vector<2x8x1xf32> -> vector<2x8x1xf32>
    %42 = vector.broadcast %41 : vector<2x8x1xf32> to vector<2x8x8xf32>
    %43 = arith.mulf %38, %42 : vector<2x8x8xf32>
    "tpu.trace_start"() <{level = 10 : i32, message = "bqk,bkd->bqd"}> : () -> ()
    %cst_16 = arith.constant dense<0.000000e+00> : vector<2x8x8xf32>
    %44 = tpu.matmul %43, %30, %cst_16 {dimension_numbers = #tpu.dot_dimension_numbers<[2], [1], [1], [2], [0, 0, 0, 1, 1, 2], [0], [0]>} : vector<2x8x8xf32>, vector<2x8x8xf32>, vector<2x8x8xf32> -> vector<2x8x8xf32>
    "tpu.trace_stop"() : () -> ()
    %c0_17 = arith.constant 0 : index
    %c0_18 = arith.constant 0 : index
    %c8 = arith.constant 8 : index
    %45 = vector.load %arg13[%c0_17, %c0_18, %c8] : memref<2x8x32xf32, #tpu.memory_space<vmem>>, vector<2x8x8xf32>
    tpu.vector_store %arg13[%c0_17, %c0_18, %c8], %44 {strides = array<i32>} : memref<2x8x32xf32, #tpu.memory_space<vmem>>, vector<2x8x8xf32>,
    %46 = vector.extract_strided_slice %5 {offsets = [0, 0, 16], sizes = [2, 8, 8], strides = [1, 1, 1]} : vector<2x8x32xf32> to vector<2x8x8xf32>
    %47 = vector.extract_strided_slice %7 {offsets = [0, 0, 16], sizes = [2, 8, 8], strides = [1, 1, 1]} : vector<2x8x32xf32> to vector<2x8x8xf32>
    %48 = vector.extract_strided_slice %9 {offsets = [0, 0, 16], sizes = [2, 8, 8], strides = [1, 1, 1]} : vector<2x8x32xf32> to vector<2x8x8xf32>
    "tpu.trace_start"() <{level = 10 : i32, message = "bqd,bkd->bqk"}> : () -> ()
    %cst_19 = arith.constant dense<0.000000e+00> : vector<2x8x8xf32>
    %49 = tpu.matmul %46, %47, %cst_19 {dimension_numbers = #tpu.dot_dimension_numbers<[2], [2], [1], [1], [0, 0, 0, 1, 1, 1], [0], [0]>} : vector<2x8x8xf32>, vector<2x8x8xf32>, vector<2x8x8xf32> -> vector<2x8x8xf32>
    "tpu.trace_stop"() : () -> ()
    %cst_20 = arith.constant 0.353553385 : f32
    %50 = vector.broadcast %cst_20 : f32 to vector<2x8x8xf32>
    %51 = arith.mulf %49, %50 : vector<2x8x8xf32>
    %cst_21 = arith.constant dense<0xFF800000> : vector<2x8xf32>
    %52 = vector.multi_reduction <maximumf>, %51, %cst_21 [2] : vector<2x8x8xf32> to vector<2x8xf32>
    %53 = vector.shape_cast %52 : vector<2x8xf32> to vector<2x8x1xf32>
    %54 = vector.broadcast %53 : vector<2x8x1xf32> to vector<2x8x8xf32>
    %55 = arith.subf %51, %54 : vector<2x8x8xf32>
    %56 = math.exp %55 : vector<2x8x8xf32>
    %cst_22 = arith.constant dense<0.000000e+00> : vector<2x8xf32>
    %57 = vector.multi_reduction <add>, %56, %cst_22 [2] : vector<2x8x8xf32> to vector<2x8xf32>
    %58 = vector.shape_cast %57 : vector<2x8xf32> to vector<2x8x1xf32>
    %59 = tpu.reciprocal %58 {approx = true} : vector<2x8x1xf32> -> vector<2x8x1xf32>
    %60 = vector.broadcast %59 : vector<2x8x1xf32> to vector<2x8x8xf32>
    %61 = arith.mulf %56, %60 : vector<2x8x8xf32>
    "tpu.trace_start"() <{level = 10 : i32, message = "bqk,bkd->bqd"}> : () -> ()
    %cst_23 = arith.constant dense<0.000000e+00> : vector<2x8x8xf32>
    %62 = tpu.matmul %61, %48, %cst_23 {dimension_numbers = #tpu.dot_dimension_numbers<[2], [1], [1], [2], [0, 0, 0, 1, 1, 2], [0], [0]>} : vector<2x8x8xf32>, vector<2x8x8xf32>, vector<2x8x8xf32> -> vector<2x8x8xf32>
    "tpu.trace_stop"() : () -> ()
    %c0_24 = arith.constant 0 : index
    %c0_25 = arith.constant 0 : index
    %c16 = arith.constant 16 : index
    %63 = vector.load %arg13[%c0_24, %c0_25, %c16] : memref<2x8x32xf32, #tpu.memory_space<vmem>>, vector<2x8x8xf32>
    tpu.vector_store %arg13[%c0_24, %c0_25, %c16], %62 {strides = array<i32>} : memref<2x8x32xf32, #tpu.memory_space<vmem>>, vector<2x8x8xf32>,
    %64 = vector.extract_strided_slice %5 {offsets = [0, 0, 24], sizes = [2, 8, 8], strides = [1, 1, 1]} : vector<2x8x32xf32> to vector<2x8x8xf32>
    %65 = vector.extract_strided_slice %7 {offsets = [0, 0, 24], sizes = [2, 8, 8], strides = [1, 1, 1]} : vector<2x8x32xf32> to vector<2x8x8xf32>
    %66 = vector.extract_strided_slice %9 {offsets = [0, 0, 24], sizes = [2, 8, 8], strides = [1, 1, 1]} : vector<2x8x32xf32> to vector<2x8x8xf32>
    "tpu.trace_start"() <{level = 10 : i32, message = "bqd,bkd->bqk"}> : () -> ()
    %cst_26 = arith.constant dense<0.000000e+00> : vector<2x8x8xf32>
    %67 = tpu.matmul %64, %65, %cst_26 {dimension_numbers = #tpu.dot_dimension_numbers<[2], [2], [1], [1], [0, 0, 0, 1, 1, 1], [0], [0]>} : vector<2x8x8xf32>, vector<2x8x8xf32>, vector<2x8x8xf32> -> vector<2x8x8xf32>
    "tpu.trace_stop"() : () -> ()
    %cst_27 = arith.constant 0.353553385 : f32
    %68 = vector.broadcast %cst_27 : f32 to vector<2x8x8xf32>
    %69 = arith.mulf %67, %68 : vector<2x8x8xf32>
    %cst_28 = arith.constant dense<0xFF800000> : vector<2x8xf32>
    %70 = vector.multi_reduction <maximumf>, %69, %cst_28 [2] : vector<2x8x8xf32> to vector<2x8xf32>
    %71 = vector.shape_cast %70 : vector<2x8xf32> to vector<2x8x1xf32>
    %72 = vector.broadcast %71 : vector<2x8x1xf32> to vector<2x8x8xf32>
    %73 = arith.subf %69, %72 : vector<2x8x8xf32>
    %74 = math.exp %73 : vector<2x8x8xf32>
    %cst_29 = arith.constant dense<0.000000e+00> : vector<2x8xf32>
    %75 = vector.multi_reduction <add>, %74, %cst_29 [2] : vector<2x8x8xf32> to vector<2x8xf32>
    %76 = vector.shape_cast %75 : vector<2x8xf32> to vector<2x8x1xf32>
    %77 = tpu.reciprocal %76 {approx = true} : vector<2x8x1xf32> -> vector<2x8x1xf32>
    %78 = vector.broadcast %77 : vector<2x8x1xf32> to vector<2x8x8xf32>
    %79 = arith.mulf %74, %78 : vector<2x8x8xf32>
    "tpu.trace_start"() <{level = 10 : i32, message = "bqk,bkd->bqd"}> : () -> ()
    %cst_30 = arith.constant dense<0.000000e+00> : vector<2x8x8xf32>
    %80 = tpu.matmul %79, %66, %cst_30 {dimension_numbers = #tpu.dot_dimension_numbers<[2], [1], [1], [2], [0, 0, 0, 1, 1, 2], [0], [0]>} : vector<2x8x8xf32>, vector<2x8x8xf32>, vector<2x8x8xf32> -> vector<2x8x8xf32>
    "tpu.trace_stop"() : () -> ()
    %c0_31 = arith.constant 0 : index
    %c0_32 = arith.constant 0 : index
    %c24 = arith.constant 24 : index
    %81 = vector.load %arg13[%c0_31, %c0_32, %c24] : memref<2x8x32xf32, #tpu.memory_space<vmem>>, vector<2x8x8xf32>
    tpu.vector_store %arg13[%c0_31, %c0_32, %c24], %80 {strides = array<i32>} : memref<2x8x32xf32, #tpu.memory_space<vmem>>, vector<2x8x8xf32>,
    %c0_33 = arith.constant 0 : index
    %c0_34 = arith.constant 0 : index
    %c0_35 = arith.constant 0 : index
    %82 = vector.load %arg13[%c0_33, %c0_34, %c0_35] : memref<2x8x32xf32, #tpu.memory_space<vmem>>, vector<2x8x32xf32>
    %83 = vector.shape_cast %82 : vector<2x8x32xf32> to vector<16x32xf32>
    %c0_36 = arith.constant 0 : index
    %c0_37 = arith.constant 0 : index
    %c0_38 = arith.constant 0 : index
    %84 = vector.load %arg3[%c0_36, %c0_37, %c0_38] : memref<2x32x32xf32, #tpu.memory_space<vmem>>, vector<1x32x32xf32>
    %85 = vector.shape_cast %84 : vector<1x32x32xf32> to vector<32x32xf32>
    %cst_39 = arith.constant dense<0.000000e+00> : vector<16x32xf32>
    %86 = tpu.matmul %83, %85, %cst_39 {dimension_numbers = #tpu.dot_dimension_numbers<[1], [0], [0], [1], [0, 0, 1, 1], [], []>} : vector<16x32xf32>, vector<32x32xf32>, vector<16x32xf32> -> vector<16x32xf32>
    %87 = arith.addf %0, %86 : vector<16x32xf32>
    %cst_40 = arith.constant dense<0.000000e+00> : vector<16xf32>
    %88 = vector.multi_reduction <add>, %87, %cst_40 [1] : vector<16x32xf32> to vector<16xf32>
    %89 = vector.shape_cast %88 : vector<16xf32> to vector<16x1xf32>
    %cst_41 = arith.constant 3.200000e+01 : f32
    %90 = vector.broadcast %cst_41 : f32 to vector<16x1xf32>
    %91 = arith.divf %89, %90 : vector<16x1xf32>
    %92 = vector.broadcast %91 : vector<16x1xf32> to vector<16x32xf32>
    %93 = arith.subf %87, %92 : vector<16x32xf32>
    %94 = arith.mulf %93, %93 : vector<16x32xf32>
    %cst_42 = arith.constant dense<0.000000e+00> : vector<16xf32>
    %95 = vector.multi_reduction <add>, %94, %cst_42 [1] : vector<16x32xf32> to vector<16xf32>
    %96 = vector.shape_cast %95 : vector<16xf32> to vector<16x1xf32>
    %cst_43 = arith.constant 3.200000e+01 : f32
    %97 = vector.broadcast %cst_43 : f32 to vector<16x1xf32>
    %98 = arith.divf %96, %97 : vector<16x1xf32>
    %99 = vector.broadcast %91 : vector<16x1xf32> to vector<16x32xf32>
    %100 = arith.subf %87, %99 : vector<16x32xf32>
    %cst_44 = arith.constant 9.99999974E-6 : f32
    %101 = vector.broadcast %cst_44 : f32 to vector<16x1xf32>
    %102 = arith.addf %98, %101 : vector<16x1xf32>
    %103 = math.rsqrt %102 : vector<16x1xf32>
    %104 = vector.broadcast %103 : vector<16x1xf32> to vector<16x32xf32>
    %105 = arith.mulf %100, %104 : vector<16x32xf32>
    %c0_45 = arith.constant 0 : index
    %c0_46 = arith.constant 0 : index
    %c0_47 = arith.constant 0 : index
    %106 = vector.load %arg4[%c0_45, %c0_46, %c0_47] : memref<2x1x32xf32, #tpu.memory_space<vmem>>, vector<1x1x32xf32>
    %107 = vector.shape_cast %106 : vector<1x1x32xf32> to vector<1x32xf32>
    %108 = vector.broadcast %107 : vector<1x32xf32> to vector<16x32xf32>
    %109 = arith.mulf %105, %108 : vector<16x32xf32>
    %c0_48 = arith.constant 0 : index
    %c0_49 = arith.constant 0 : index
    %c0_50 = arith.constant 0 : index
    %110 = vector.load %arg5[%c0_48, %c0_49, %c0_50] : memref<2x1x32xf32, #tpu.memory_space<vmem>>, vector<1x1x32xf32>
    %111 = vector.shape_cast %110 : vector<1x1x32xf32> to vector<1x32xf32>
    %112 = vector.broadcast %111 : vector<1x32xf32> to vector<16x32xf32>
    %113 = arith.addf %109, %112 : vector<16x32xf32>
    %c0_51 = arith.constant 0 : index
    %c0_52 = arith.constant 0 : index
    %c0_53 = arith.constant 0 : index
    %114 = vector.load %arg6[%c0_51, %c0_52, %c0_53] : memref<2x32x64xf32, #tpu.memory_space<vmem>>, vector<1x32x64xf32>
    %115 = vector.shape_cast %114 : vector<1x32x64xf32> to vector<32x64xf32>
    %cst_54 = arith.constant dense<0.000000e+00> : vector<16x64xf32>
    %116 = tpu.matmul %113, %115, %cst_54 {dimension_numbers = #tpu.dot_dimension_numbers<[1], [0], [0], [1], [0, 0, 1, 1], [], []>} : vector<16x32xf32>, vector<32x64xf32>, vector<16x64xf32> -> vector<16x64xf32>
    %c0_55 = arith.constant 0 : index
    %c0_56 = arith.constant 0 : index
    %c0_57 = arith.constant 0 : index
    %117 = vector.load %arg7[%c0_55, %c0_56, %c0_57] : memref<2x1x64xf32, #tpu.memory_space<vmem>>, vector<1x1x64xf32>
    %118 = vector.shape_cast %117 : vector<1x1x64xf32> to vector<1x64xf32>
    %119 = vector.broadcast %118 : vector<1x64xf32> to vector<16x64xf32>
    %120 = arith.addf %116, %119 : vector<16x64xf32>
    %cst_58 = arith.constant 5.000000e-01 : f32
    %121 = vector.broadcast %cst_58 : f32 to vector<16x64xf32>
    %122 = arith.mulf %121, %120 : vector<16x64xf32>
    %cst_59 = arith.constant 0.707106769 : f32
    %123 = vector.broadcast %cst_59 : f32 to vector<16x64xf32>
    %124 = arith.mulf %120, %123 : vector<16x64xf32>
    %125 = math.erf %124 : vector<16x64xf32>
    %cst_60 = arith.constant 1.000000e+00 : f32
    %126 = vector.broadcast %cst_60 : f32 to vector<16x64xf32>
    %127 = arith.addf %126, %125 : vector<16x64xf32>
    %128 = arith.mulf %122, %127 : vector<16x64xf32>
    %c0_61 = arith.constant 0 : index
    %c0_62 = arith.constant 0 : index
    %c0_63 = arith.constant 0 : index
    %129 = vector.load %arg8[%c0_61, %c0_62, %c0_63] : memref<2x64x32xf32, #tpu.memory_space<vmem>>, vector<1x64x32xf32>
    %130 = vector.shape_cast %129 : vector<1x64x32xf32> to vector<64x32xf32>
    %cst_64 = arith.constant dense<0.000000e+00> : vector<16x32xf32>
    %131 = tpu.matmul %128, %130, %cst_64 {dimension_numbers = #tpu.dot_dimension_numbers<[1], [0], [0], [1], [0, 0, 1, 1], [], []>} : vector<16x64xf32>, vector<64x32xf32>, vector<16x32xf32> -> vector<16x32xf32>
    %c0_65 = arith.constant 0 : index
    %c0_66 = arith.constant 0 : index
    %c0_67 = arith.constant 0 : index
    %132 = vector.load %arg9[%c0_65, %c0_66, %c0_67] : memref<2x1x32xf32, #tpu.memory_space<vmem>>, vector<1x1x32xf32>
    %133 = vector.shape_cast %132 : vector<1x1x32xf32> to vector<1x32xf32>
    %134 = vector.broadcast %133 : vector<1x32xf32> to vector<16x32xf32>
    %135 = arith.addf %131, %134 : vector<16x32xf32>
    %136 = arith.addf %113, %135 : vector<16x32xf32>
    %cst_68 = arith.constant dense<0.000000e+00> : vector<16xf32>
    %137 = vector.multi_reduction <add>, %136, %cst_68 [1] : vector<16x32xf32> to vector<16xf32>
    %138 = vector.shape_cast %137 : vector<16xf32> to vector<16x1xf32>
    %cst_69 = arith.constant 3.200000e+01 : f32
    %139 = vector.broadcast %cst_69 : f32 to vector<16x1xf32>
    %140 = arith.divf %138, %139 : vector<16x1xf32>
    %141 = vector.broadcast %140 : vector<16x1xf32> to vector<16x32xf32>
    %142 = arith.subf %136, %141 : vector<16x32xf32>
    %143 = arith.mulf %142, %142 : vector<16x32xf32>
    %cst_70 = arith.constant dense<0.000000e+00> : vector<16xf32>
    %144 = vector.multi_reduction <add>, %143, %cst_70 [1] : vector<16x32xf32> to vector<16xf32>
    %145 = vector.shape_cast %144 : vector<16xf32> to vector<16x1xf32>
    %cst_71 = arith.constant 3.200000e+01 : f32
    %146 = vector.broadcast %cst_71 : f32 to vector<16x1xf32>
    %147 = arith.divf %145, %146 : vector<16x1xf32>
    %148 = vector.broadcast %140 : vector<16x1xf32> to vector<16x32xf32>
    %149 = arith.subf %136, %148 : vector<16x32xf32>
    %cst_72 = arith.constant 9.99999974E-6 : f32
    %150 = vector.broadcast %cst_72 : f32 to vector<16x1xf32>
    %151 = arith.addf %147, %150 : vector<16x1xf32>
    %152 = math.rsqrt %151 : vector<16x1xf32>
    %153 = vector.broadcast %152 : vector<16x1xf32> to vector<16x32xf32>
    %154 = arith.mulf %149, %153 : vector<16x32xf32>
    %c0_73 = arith.constant 0 : index
    %c0_74 = arith.constant 0 : index
    %c0_75 = arith.constant 0 : index
    %155 = vector.load %arg10[%c0_73, %c0_74, %c0_75] : memref<2x1x32xf32, #tpu.memory_space<vmem>>, vector<1x1x32xf32>
    %156 = vector.shape_cast %155 : vector<1x1x32xf32> to vector<1x32xf32>
    %157 = vector.broadcast %156 : vector<1x32xf32> to vector<16x32xf32>
    %158 = arith.mulf %154, %157 : vector<16x32xf32>
    %c0_76 = arith.constant 0 : index
    %c0_77 = arith.constant 0 : index
    %c0_78 = arith.constant 0 : index
    %159 = vector.load %arg11[%c0_76, %c0_77, %c0_78] : memref<2x1x32xf32, #tpu.memory_space<vmem>>, vector<1x1x32xf32>
    %160 = vector.shape_cast %159 : vector<1x1x32xf32> to vector<1x32xf32>
    %161 = vector.broadcast %160 : vector<1x32xf32> to vector<16x32xf32>
    %162 = arith.addf %158, %161 : vector<16x32xf32>
    %c1 = arith.constant 1 : index
    %c0_79 = arith.constant 0 : index
    %c0_80 = arith.constant 0 : index
    %163 = vector.load %arg2[%c1, %c0_79, %c0_80] : memref<2x32x96xf32, #tpu.memory_space<vmem>>, vector<1x32x96xf32>
    %164 = vector.shape_cast %163 : vector<1x32x96xf32> to vector<32x96xf32>
    %cst_81 = arith.constant dense<0.000000e+00> : vector<16x96xf32>
    %165 = tpu.matmul %162, %164, %cst_81 {dimension_numbers = #tpu.dot_dimension_numbers<[1], [0], [0], [1], [0, 0, 1, 1], [], []>} : vector<16x32xf32>, vector<32x96xf32>, vector<16x96xf32> -> vector<16x96xf32>
    %166 = vector.extract_strided_slice %165 {offsets = [0, 0], sizes = [16, 32], strides = [1, 1]} : vector<16x96xf32> to vector<16x32xf32>
    %167 = vector.shape_cast %166 : vector<16x32xf32> to vector<2x8x32xf32>
    %168 = vector.extract_strided_slice %165 {offsets = [0, 32], sizes = [16, 32], strides = [1, 1]} : vector<16x96xf32> to vector<16x32xf32>
    %169 = vector.shape_cast %168 : vector<16x32xf32> to vector<2x8x32xf32>
    %170 = vector.extract_strided_slice %165 {offsets = [0, 64], sizes = [16, 32], strides = [1, 1]} : vector<16x96xf32> to vector<16x32xf32>
    %171 = vector.shape_cast %170 : vector<16x32xf32> to vector<2x8x32xf32>
    %172 = vector.extract_strided_slice %167 {offsets = [0, 0, 0], sizes = [2, 8, 8], strides = [1, 1, 1]} : vector<2x8x32xf32> to vector<2x8x8xf32>
    %173 = vector.extract_strided_slice %169 {offsets = [0, 0, 0], sizes = [2, 8, 8], strides = [1, 1, 1]} : vector<2x8x32xf32> to vector<2x8x8xf32>
    %174 = vector.extract_strided_slice %171 {offsets = [0, 0, 0], sizes = [2, 8, 8], strides = [1, 1, 1]} : vector<2x8x32xf32> to vector<2x8x8xf32>
    "tpu.trace_start"() <{level = 10 : i32, message = "bqd,bkd->bqk"}> : () -> ()
    %cst_82 = arith.constant dense<0.000000e+00> : vector<2x8x8xf32>
    %175 = tpu.matmul %172, %173, %cst_82 {dimension_numbers = #tpu.dot_dimension_numbers<[2], [2], [1], [1], [0, 0, 0, 1, 1, 1], [0], [0]>} : vector<2x8x8xf32>, vector<2x8x8xf32>, vector<2x8x8xf32> -> vector<2x8x8xf32>
    "tpu.trace_stop"() : () -> ()
    %cst_83 = arith.constant 0.353553385 : f32
    %176 = vector.broadcast %cst_83 : f32 to vector<2x8x8xf32>
    %177 = arith.mulf %175, %176 : vector<2x8x8xf32>
    %cst_84 = arith.constant dense<0xFF800000> : vector<2x8xf32>
    %178 = vector.multi_reduction <maximumf>, %177, %cst_84 [2] : vector<2x8x8xf32> to vector<2x8xf32>
    %179 = vector.shape_cast %178 : vector<2x8xf32> to vector<2x8x1xf32>
    %180 = vector.broadcast %179 : vector<2x8x1xf32> to vector<2x8x8xf32>
    %181 = arith.subf %177, %180 : vector<2x8x8xf32>
    %182 = math.exp %181 : vector<2x8x8xf32>
    %cst_85 = arith.constant dense<0.000000e+00> : vector<2x8xf32>
    %183 = vector.multi_reduction <add>, %182, %cst_85 [2] : vector<2x8x8xf32> to vector<2x8xf32>
    %184 = vector.shape_cast %183 : vector<2x8xf32> to vector<2x8x1xf32>
    %185 = tpu.reciprocal %184 {approx = true} : vector<2x8x1xf32> -> vector<2x8x1xf32>
    %186 = vector.broadcast %185 : vector<2x8x1xf32> to vector<2x8x8xf32>
    %187 = arith.mulf %182, %186 : vector<2x8x8xf32>
    "tpu.trace_start"() <{level = 10 : i32, message = "bqk,bkd->bqd"}> : () -> ()
    %cst_86 = arith.constant dense<0.000000e+00> : vector<2x8x8xf32>
    %188 = tpu.matmul %187, %174, %cst_86 {dimension_numbers = #tpu.dot_dimension_numbers<[2], [1], [1], [2], [0, 0, 0, 1, 1, 2], [0], [0]>} : vector<2x8x8xf32>, vector<2x8x8xf32>, vector<2x8x8xf32> -> vector<2x8x8xf32>
    "tpu.trace_stop"() : () -> ()
    %c0_87 = arith.constant 0 : index
    %c0_88 = arith.constant 0 : index
    %c0_89 = arith.constant 0 : index
    %189 = vector.load %arg13[%c0_87, %c0_88, %c0_89] : memref<2x8x32xf32, #tpu.memory_space<vmem>>, vector<2x8x8xf32>
    tpu.vector_store %arg13[%c0_87, %c0_88, %c0_89], %188 {strides = array<i32>} : memref<2x8x32xf32, #tpu.memory_space<vmem>>, vector<2x8x8xf32>,
    %190 = vector.extract_strided_slice %167 {offsets = [0, 0, 8], sizes = [2, 8, 8], strides = [1, 1, 1]} : vector<2x8x32xf32> to vector<2x8x8xf32>
    %191 = vector.extract_strided_slice %169 {offsets = [0, 0, 8], sizes = [2, 8, 8], strides = [1, 1, 1]} : vector<2x8x32xf32> to vector<2x8x8xf32>
    %192 = vector.extract_strided_slice %171 {offsets = [0, 0, 8], sizes = [2, 8, 8], strides = [1, 1, 1]} : vector<2x8x32xf32> to vector<2x8x8xf32>
    "tpu.trace_start"() <{level = 10 : i32, message = "bqd,bkd->bqk"}> : () -> ()
    %cst_90 = arith.constant dense<0.000000e+00> : vector<2x8x8xf32>
    %193 = tpu.matmul %190, %191, %cst_90 {dimension_numbers = #tpu.dot_dimension_numbers<[2], [2], [1], [1], [0, 0, 0, 1, 1, 1], [0], [0]>} : vector<2x8x8xf32>, vector<2x8x8xf32>, vector<2x8x8xf32> -> vector<2x8x8xf32>
    "tpu.trace_stop"() : () -> ()
    %cst_91 = arith.constant 0.353553385 : f32
    %194 = vector.broadcast %cst_91 : f32 to vector<2x8x8xf32>
    %195 = arith.mulf %193, %194 : vector<2x8x8xf32>
    %cst_92 = arith.constant dense<0xFF800000> : vector<2x8xf32>
    %196 = vector.multi_reduction <maximumf>, %195, %cst_92 [2] : vector<2x8x8xf32> to vector<2x8xf32>
    %197 = vector.shape_cast %196 : vector<2x8xf32> to vector<2x8x1xf32>
    %198 = vector.broadcast %197 : vector<2x8x1xf32> to vector<2x8x8xf32>
    %199 = arith.subf %195, %198 : vector<2x8x8xf32>
    %200 = math.exp %199 : vector<2x8x8xf32>
    %cst_93 = arith.constant dense<0.000000e+00> : vector<2x8xf32>
    %201 = vector.multi_reduction <add>, %200, %cst_93 [2] : vector<2x8x8xf32> to vector<2x8xf32>
    %202 = vector.shape_cast %201 : vector<2x8xf32> to vector<2x8x1xf32>
    %203 = tpu.reciprocal %202 {approx = true} : vector<2x8x1xf32> -> vector<2x8x1xf32>
    %204 = vector.broadcast %203 : vector<2x8x1xf32> to vector<2x8x8xf32>
    %205 = arith.mulf %200, %204 : vector<2x8x8xf32>
    "tpu.trace_start"() <{level = 10 : i32, message = "bqk,bkd->bqd"}> : () -> ()
    %cst_94 = arith.constant dense<0.000000e+00> : vector<2x8x8xf32>
    %206 = tpu.matmul %205, %192, %cst_94 {dimension_numbers = #tpu.dot_dimension_numbers<[2], [1], [1], [2], [0, 0, 0, 1, 1, 2], [0], [0]>} : vector<2x8x8xf32>, vector<2x8x8xf32>, vector<2x8x8xf32> -> vector<2x8x8xf32>
    "tpu.trace_stop"() : () -> ()
    %c0_95 = arith.constant 0 : index
    %c0_96 = arith.constant 0 : index
    %c8_97 = arith.constant 8 : index
    %207 = vector.load %arg13[%c0_95, %c0_96, %c8_97] : memref<2x8x32xf32, #tpu.memory_space<vmem>>, vector<2x8x8xf32>
    tpu.vector_store %arg13[%c0_95, %c0_96, %c8_97], %206 {strides = array<i32>} : memref<2x8x32xf32, #tpu.memory_space<vmem>>, vector<2x8x8xf32>,
    %208 = vector.extract_strided_slice %167 {offsets = [0, 0, 16], sizes = [2, 8, 8], strides = [1, 1, 1]} : vector<2x8x32xf32> to vector<2x8x8xf32>
    %209 = vector.extract_strided_slice %169 {offsets = [0, 0, 16], sizes = [2, 8, 8], strides = [1, 1, 1]} : vector<2x8x32xf32> to vector<2x8x8xf32>
    %210 = vector.extract_strided_slice %171 {offsets = [0, 0, 16], sizes = [2, 8, 8], strides = [1, 1, 1]} : vector<2x8x32xf32> to vector<2x8x8xf32>
    "tpu.trace_start"() <{level = 10 : i32, message = "bqd,bkd->bqk"}> : () -> ()
    %cst_98 = arith.constant dense<0.000000e+00> : vector<2x8x8xf32>
    %211 = tpu.matmul %208, %209, %cst_98 {dimension_numbers = #tpu.dot_dimension_numbers<[2], [2], [1], [1], [0, 0, 0, 1, 1, 1], [0], [0]>} : vector<2x8x8xf32>, vector<2x8x8xf32>, vector<2x8x8xf32> -> vector<2x8x8xf32>
    "tpu.trace_stop"() : () -> ()
    %cst_99 = arith.constant 0.353553385 : f32
    %212 = vector.broadcast %cst_99 : f32 to vector<2x8x8xf32>
    %213 = arith.mulf %211, %212 : vector<2x8x8xf32>
    %cst_100 = arith.constant dense<0xFF800000> : vector<2x8xf32>
    %214 = vector.multi_reduction <maximumf>, %213, %cst_100 [2] : vector<2x8x8xf32> to vector<2x8xf32>
    %215 = vector.shape_cast %214 : vector<2x8xf32> to vector<2x8x1xf32>
    %216 = vector.broadcast %215 : vector<2x8x1xf32> to vector<2x8x8xf32>
    %217 = arith.subf %213, %216 : vector<2x8x8xf32>
    %218 = math.exp %217 : vector<2x8x8xf32>
    %cst_101 = arith.constant dense<0.000000e+00> : vector<2x8xf32>
    %219 = vector.multi_reduction <add>, %218, %cst_101 [2] : vector<2x8x8xf32> to vector<2x8xf32>
    %220 = vector.shape_cast %219 : vector<2x8xf32> to vector<2x8x1xf32>
    %221 = tpu.reciprocal %220 {approx = true} : vector<2x8x1xf32> -> vector<2x8x1xf32>
    %222 = vector.broadcast %221 : vector<2x8x1xf32> to vector<2x8x8xf32>
    %223 = arith.mulf %218, %222 : vector<2x8x8xf32>
    "tpu.trace_start"() <{level = 10 : i32, message = "bqk,bkd->bqd"}> : () -> ()
    %cst_102 = arith.constant dense<0.000000e+00> : vector<2x8x8xf32>
    %224 = tpu.matmul %223, %210, %cst_102 {dimension_numbers = #tpu.dot_dimension_numbers<[2], [1], [1], [2], [0, 0, 0, 1, 1, 2], [0], [0]>} : vector<2x8x8xf32>, vector<2x8x8xf32>, vector<2x8x8xf32> -> vector<2x8x8xf32>
    "tpu.trace_stop"() : () -> ()
    %c0_103 = arith.constant 0 : index
    %c0_104 = arith.constant 0 : index
    %c16_105 = arith.constant 16 : index
    %225 = vector.load %arg13[%c0_103, %c0_104, %c16_105] : memref<2x8x32xf32, #tpu.memory_space<vmem>>, vector<2x8x8xf32>
    tpu.vector_store %arg13[%c0_103, %c0_104, %c16_105], %224 {strides = array<i32>} : memref<2x8x32xf32, #tpu.memory_space<vmem>>, vector<2x8x8xf32>,
    %226 = vector.extract_strided_slice %167 {offsets = [0, 0, 24], sizes = [2, 8, 8], strides = [1, 1, 1]} : vector<2x8x32xf32> to vector<2x8x8xf32>
    %227 = vector.extract_strided_slice %169 {offsets = [0, 0, 24], sizes = [2, 8, 8], strides = [1, 1, 1]} : vector<2x8x32xf32> to vector<2x8x8xf32>
    %228 = vector.extract_strided_slice %171 {offsets = [0, 0, 24], sizes = [2, 8, 8], strides = [1, 1, 1]} : vector<2x8x32xf32> to vector<2x8x8xf32>
    "tpu.trace_start"() <{level = 10 : i32, message = "bqd,bkd->bqk"}> : () -> ()
    %cst_106 = arith.constant dense<0.000000e+00> : vector<2x8x8xf32>
    %229 = tpu.matmul %226, %227, %cst_106 {dimension_numbers = #tpu.dot_dimension_numbers<[2], [2], [1], [1], [0, 0, 0, 1, 1, 1], [0], [0]>} : vector<2x8x8xf32>, vector<2x8x8xf32>, vector<2x8x8xf32> -> vector<2x8x8xf32>
    "tpu.trace_stop"() : () -> ()
    %cst_107 = arith.constant 0.353553385 : f32
    %230 = vector.broadcast %cst_107 : f32 to vector<2x8x8xf32>
    %231 = arith.mulf %229, %230 : vector<2x8x8xf32>
    %cst_108 = arith.constant dense<0xFF800000> : vector<2x8xf32>
    %232 = vector.multi_reduction <maximumf>, %231, %cst_108 [2] : vector<2x8x8xf32> to vector<2x8xf32>
    %233 = vector.shape_cast %232 : vector<2x8xf32> to vector<2x8x1xf32>
    %234 = vector.broadcast %233 : vector<2x8x1xf32> to vector<2x8x8xf32>
    %235 = arith.subf %231, %234 : vector<2x8x8xf32>
    %236 = math.exp %235 : vector<2x8x8xf32>
    %cst_109 = arith.constant dense<0.000000e+00> : vector<2x8xf32>
    %237 = vector.multi_reduction <add>, %236, %cst_109 [2] : vector<2x8x8xf32> to vector<2x8xf32>
    %238 = vector.shape_cast %237 : vector<2x8xf32> to vector<2x8x1xf32>
    %239 = tpu.reciprocal %238 {approx = true} : vector<2x8x1xf32> -> vector<2x8x1xf32>
    %240 = vector.broadcast %239 : vector<2x8x1xf32> to vector<2x8x8xf32>
    %241 = arith.mulf %236, %240 : vector<2x8x8xf32>
    "tpu.trace_start"() <{level = 10 : i32, message = "bqk,bkd->bqd"}> : () -> ()
    %cst_110 = arith.constant dense<0.000000e+00> : vector<2x8x8xf32>
    %242 = tpu.matmul %241, %228, %cst_110 {dimension_numbers = #tpu.dot_dimension_numbers<[2], [1], [1], [2], [0, 0, 0, 1, 1, 2], [0], [0]>} : vector<2x8x8xf32>, vector<2x8x8xf32>, vector<2x8x8xf32> -> vector<2x8x8xf32>
    "tpu.trace_stop"() : () -> ()
    %c0_111 = arith.constant 0 : index
    %c0_112 = arith.constant 0 : index
    %c24_113 = arith.constant 24 : index
    %243 = vector.load %arg13[%c0_111, %c0_112, %c24_113] : memref<2x8x32xf32, #tpu.memory_space<vmem>>, vector<2x8x8xf32>
    tpu.vector_store %arg13[%c0_111, %c0_112, %c24_113], %242 {strides = array<i32>} : memref<2x8x32xf32, #tpu.memory_space<vmem>>, vector<2x8x8xf32>,
    %c0_114 = arith.constant 0 : index
    %c0_115 = arith.constant 0 : index
    %c0_116 = arith.constant 0 : index
    %244 = vector.load %arg13[%c0_114, %c0_115, %c0_116] : memref<2x8x32xf32, #tpu.memory_space<vmem>>, vector<2x8x32xf32>
    %245 = vector.shape_cast %244 : vector<2x8x32xf32> to vector<16x32xf32>
    %c1_117 = arith.constant 1 : index
    %c0_118 = arith.constant 0 : index
    %c0_119 = arith.constant 0 : index
    %246 = vector.load %arg3[%c1_117, %c0_118, %c0_119] : memref<2x32x32xf32, #tpu.memory_space<vmem>>, vector<1x32x32xf32>
    %247 = vector.shape_cast %246 : vector<1x32x32xf32> to vector<32x32xf32>
    %cst_120 = arith.constant dense<0.000000e+00> : vector<16x32xf32>
    %248 = tpu.matmul %245, %247, %cst_120 {dimension_numbers = #tpu.dot_dimension_numbers<[1], [0], [0], [1], [0, 0, 1, 1], [], []>} : vector<16x32xf32>, vector<32x32xf32>, vector<16x32xf32> -> vector<16x32xf32>
    %249 = arith.addf %162, %248 : vector<16x32xf32>
    %cst_121 = arith.constant dense<0.000000e+00> : vector<16xf32>
    %250 = vector.multi_reduction <add>, %249, %cst_121 [1] : vector<16x32xf32> to vector<16xf32>
    %251 = vector.shape_cast %250 : vector<16xf32> to vector<16x1xf32>
    %cst_122 = arith.constant 3.200000e+01 : f32
    %252 = vector.broadcast %cst_122 : f32 to vector<16x1xf32>
    %253 = arith.divf %251, %252 : vector<16x1xf32>
    %254 = vector.broadcast %253 : vector<16x1xf32> to vector<16x32xf32>
    %255 = arith.subf %249, %254 : vector<16x32xf32>
    %256 = arith.mulf %255, %255 : vector<16x32xf32>
    %cst_123 = arith.constant dense<0.000000e+00> : vector<16xf32>
    %257 = vector.multi_reduction <add>, %256, %cst_123 [1] : vector<16x32xf32> to vector<16xf32>
    %258 = vector.shape_cast %257 : vector<16xf32> to vector<16x1xf32>
    %cst_124 = arith.constant 3.200000e+01 : f32
    %259 = vector.broadcast %cst_124 : f32 to vector<16x1xf32>
    %260 = arith.divf %258, %259 : vector<16x1xf32>
    %261 = vector.broadcast %253 : vector<16x1xf32> to vector<16x32xf32>
    %262 = arith.subf %249, %261 : vector<16x32xf32>
    %cst_125 = arith.constant 9.99999974E-6 : f32
    %263 = vector.broadcast %cst_125 : f32 to vector<16x1xf32>
    %264 = arith.addf %260, %263 : vector<16x1xf32>
    %265 = math.rsqrt %264 : vector<16x1xf32>
    %266 = vector.broadcast %265 : vector<16x1xf32> to vector<16x32xf32>
    %267 = arith.mulf %262, %266 : vector<16x32xf32>
    %c1_126 = arith.constant 1 : index
    %c0_127 = arith.constant 0 : index
    %c0_128 = arith.constant 0 : index
    %268 = vector.load %arg4[%c1_126, %c0_127, %c0_128] : memref<2x1x32xf32, #tpu.memory_space<vmem>>, vector<1x1x32xf32>
    %269 = vector.shape_cast %268 : vector<1x1x32xf32> to vector<1x32xf32>
    %270 = vector.broadcast %269 : vector<1x32xf32> to vector<16x32xf32>
    %271 = arith.mulf %267, %270 : vector<16x32xf32>
    %c1_129 = arith.constant 1 : index
    %c0_130 = arith.constant 0 : index
    %c0_131 = arith.constant 0 : index
    %272 = vector.load %arg5[%c1_129, %c0_130, %c0_131] : memref<2x1x32xf32, #tpu.memory_space<vmem>>, vector<1x1x32xf32>
    %273 = vector.shape_cast %272 : vector<1x1x32xf32> to vector<1x32xf32>
    %274 = vector.broadcast %273 : vector<1x32xf32> to vector<16x32xf32>
    %275 = arith.addf %271, %274 : vector<16x32xf32>
    %c1_132 = arith.constant 1 : index
    %c0_133 = arith.constant 0 : index
    %c0_134 = arith.constant 0 : index
    %276 = vector.load %arg6[%c1_132, %c0_133, %c0_134] : memref<2x32x64xf32, #tpu.memory_space<vmem>>, vector<1x32x64xf32>
    %277 = vector.shape_cast %276 : vector<1x32x64xf32> to vector<32x64xf32>
    %cst_135 = arith.constant dense<0.000000e+00> : vector<16x64xf32>
    %278 = tpu.matmul %275, %277, %cst_135 {dimension_numbers = #tpu.dot_dimension_numbers<[1], [0], [0], [1], [0, 0, 1, 1], [], []>} : vector<16x32xf32>, vector<32x64xf32>, vector<16x64xf32> -> vector<16x64xf32>
    %c1_136 = arith.constant 1 : index
    %c0_137 = arith.constant 0 : index
    %c0_138 = arith.constant 0 : index
    %279 = vector.load %arg7[%c1_136, %c0_137, %c0_138] : memref<2x1x64xf32, #tpu.memory_space<vmem>>, vector<1x1x64xf32>
    %280 = vector.shape_cast %279 : vector<1x1x64xf32> to vector<1x64xf32>
    %281 = vector.broadcast %280 : vector<1x64xf32> to vector<16x64xf32>
    %282 = arith.addf %278, %281 : vector<16x64xf32>
    %cst_139 = arith.constant 5.000000e-01 : f32
    %283 = vector.broadcast %cst_139 : f32 to vector<16x64xf32>
    %284 = arith.mulf %283, %282 : vector<16x64xf32>
    %cst_140 = arith.constant 0.707106769 : f32
    %285 = vector.broadcast %cst_140 : f32 to vector<16x64xf32>
    %286 = arith.mulf %282, %285 : vector<16x64xf32>
    %287 = math.erf %286 : vector<16x64xf32>
    %cst_141 = arith.constant 1.000000e+00 : f32
    %288 = vector.broadcast %cst_141 : f32 to vector<16x64xf32>
    %289 = arith.addf %288, %287 : vector<16x64xf32>
    %290 = arith.mulf %284, %289 : vector<16x64xf32>
    %c1_142 = arith.constant 1 : index
    %c0_143 = arith.constant 0 : index
    %c0_144 = arith.constant 0 : index
    %291 = vector.load %arg8[%c1_142, %c0_143, %c0_144] : memref<2x64x32xf32, #tpu.memory_space<vmem>>, vector<1x64x32xf32>
    %292 = vector.shape_cast %291 : vector<1x64x32xf32> to vector<64x32xf32>
    %cst_145 = arith.constant dense<0.000000e+00> : vector<16x32xf32>
    %293 = tpu.matmul %290, %292, %cst_145 {dimension_numbers = #tpu.dot_dimension_numbers<[1], [0], [0], [1], [0, 0, 1, 1], [], []>} : vector<16x64xf32>, vector<64x32xf32>, vector<16x32xf32> -> vector<16x32xf32>
    %c1_146 = arith.constant 1 : index
    %c0_147 = arith.constant 0 : index
    %c0_148 = arith.constant 0 : index
    %294 = vector.load %arg9[%c1_146, %c0_147, %c0_148] : memref<2x1x32xf32, #tpu.memory_space<vmem>>, vector<1x1x32xf32>
    %295 = vector.shape_cast %294 : vector<1x1x32xf32> to vector<1x32xf32>
    %296 = vector.broadcast %295 : vector<1x32xf32> to vector<16x32xf32>
    %297 = arith.addf %293, %296 : vector<16x32xf32>
    %298 = arith.addf %275, %297 : vector<16x32xf32>
    %cst_149 = arith.constant dense<0.000000e+00> : vector<16xf32>
    %299 = vector.multi_reduction <add>, %298, %cst_149 [1] : vector<16x32xf32> to vector<16xf32>
    %300 = vector.shape_cast %299 : vector<16xf32> to vector<16x1xf32>
    %cst_150 = arith.constant 3.200000e+01 : f32
    %301 = vector.broadcast %cst_150 : f32 to vector<16x1xf32>
    %302 = arith.divf %300, %301 : vector<16x1xf32>
    %303 = vector.broadcast %302 : vector<16x1xf32> to vector<16x32xf32>
    %304 = arith.subf %298, %303 : vector<16x32xf32>
    %305 = arith.mulf %304, %304 : vector<16x32xf32>
    %cst_151 = arith.constant dense<0.000000e+00> : vector<16xf32>
    %306 = vector.multi_reduction <add>, %305, %cst_151 [1] : vector<16x32xf32> to vector<16xf32>
    %307 = vector.shape_cast %306 : vector<16xf32> to vector<16x1xf32>
    %cst_152 = arith.constant 3.200000e+01 : f32
    %308 = vector.broadcast %cst_152 : f32 to vector<16x1xf32>
    %309 = arith.divf %307, %308 : vector<16x1xf32>
    %310 = vector.broadcast %302 : vector<16x1xf32> to vector<16x32xf32>
    %311 = arith.subf %298, %310 : vector<16x32xf32>
    %cst_153 = arith.constant 9.99999974E-6 : f32
    %312 = vector.broadcast %cst_153 : f32 to vector<16x1xf32>
    %313 = arith.addf %309, %312 : vector<16x1xf32>
    %314 = math.rsqrt %313 : vector<16x1xf32>
    %315 = vector.broadcast %314 : vector<16x1xf32> to vector<16x32xf32>
    %316 = arith.mulf %311, %315 : vector<16x32xf32>
    %c1_154 = arith.constant 1 : index
    %c0_155 = arith.constant 0 : index
    %c0_156 = arith.constant 0 : index
    %317 = vector.load %arg10[%c1_154, %c0_155, %c0_156] : memref<2x1x32xf32, #tpu.memory_space<vmem>>, vector<1x1x32xf32>
    %318 = vector.shape_cast %317 : vector<1x1x32xf32> to vector<1x32xf32>
    %319 = vector.broadcast %318 : vector<1x32xf32> to vector<16x32xf32>
    %320 = arith.mulf %316, %319 : vector<16x32xf32>
    %c1_157 = arith.constant 1 : index
    %c0_158 = arith.constant 0 : index
    %c0_159 = arith.constant 0 : index
    %321 = vector.load %arg11[%c1_157, %c0_158, %c0_159] : memref<2x1x32xf32, #tpu.memory_space<vmem>>, vector<1x1x32xf32>
    %322 = vector.shape_cast %321 : vector<1x1x32xf32> to vector<1x32xf32>
    %323 = vector.broadcast %322 : vector<1x32xf32> to vector<16x32xf32>
    %324 = arith.addf %320, %323 : vector<16x32xf32>
    %c0_160 = arith.constant 0 : index
    %c0_161 = arith.constant 0 : index
    %325 = vector.load %arg12[%c0_160, %c0_161] : memref<16x32xf32, #tpu.memory_space<vmem>>, vector<16x32xf32>
    tpu.vector_store %arg12[%c0_160, %c0_161], %324 {strides = array<i32>} : memref<16x32xf32, #tpu.memory_space<vmem>>, vector<16x32xf32>,
    return
  }
  func.func @transform_0(%arg0: i32) -> (i32, i32) {
    %c0_i32 = arith.constant 0 : i32
    %c0_i32_0 = arith.constant 0 : i32
    return %arg0, %c0_i32 : i32, i32
  }
  func.func @transform_1(%arg0: i32) -> (i32, i32, i32) {
    %c0_i32 = arith.constant 0 : i32
    %c0_i32_0 = arith.constant 0 : i32
    %c0_i32_1 = arith.constant 0 : i32
    %c0_i32_2 = arith.constant 0 : i32
    return %c0_i32, %c0_i32_0, %c0_i32_1 : i32, i32, i32
  }
  func.func @transform_2(%arg0: i32) -> (i32, i32, i32) {
    %c0_i32 = arith.constant 0 : i32
    %c0_i32_0 = arith.constant 0 : i32
    %c0_i32_1 = arith.constant 0 : i32
    %c0_i32_2 = arith.constant 0 : i32
    return %c0_i32, %c0_i32_0, %c0_i32_1 : i32, i32, i32
  }
  func.func @transform_3(%arg0: i32) -> (i32, i32, i32) {
    %c0_i32 = arith.constant 0 : i32
    %c0_i32_0 = arith.constant 0 : i32
    %c0_i32_1 = arith.constant 0 : i32
    %c0_i32_2 = arith.constant 0 : i32
    return %c0_i32, %c0_i32_0, %c0_i32_1 : i32, i32, i32
  }
  func.func @transform_4(%arg0: i32) -> (i32, i32, i32) {
    %c0_i32 = arith.constant 0 : i32
    %c0_i32_0 = arith.constant 0 : i32
    %c0_i32_1 = arith.constant 0 : i32
    %c0_i32_2 = arith.constant 0 : i32
    return %c0_i32, %c0_i32_0, %c0_i32_1 : i32, i32, i32
  }
  func.func @transform_5(%arg0: i32) -> (i32, i32, i32) {
    %c0_i32 = arith.constant 0 : i32
    %c0_i32_0 = arith.constant 0 : i32
    %c0_i32_1 = arith.constant 0 : i32
    %c0_i32_2 = arith.constant 0 : i32
    return %c0_i32, %c0_i32_0, %c0_i32_1 : i32, i32, i32
  }
  func.func @transform_6(%arg0: i32) -> (i32, i32, i32) {
    %c0_i32 = arith.constant 0 : i32
    %c0_i32_0 = arith.constant 0 : i32
    %c0_i32_1 = arith.constant 0 : i32
    %c0_i32_2 = arith.constant 0 : i32
    return %c0_i32, %c0_i32_0, %c0_i32_1 : i32, i32, i32
  }
  func.func @transform_7(%arg0: i32) -> (i32, i32, i32) {
    %c0_i32 = arith.constant 0 : i32
    %c0_i32_0 = arith.constant 0 : i32
    %c0_i32_1 = arith.constant 0 : i32
    %c0_i32_2 = arith.constant 0 : i32
    return %c0_i32, %c0_i32_0, %c0_i32_1 : i32, i32, i32
  }
  func.func @transform_8(%arg0: i32) -> (i32, i32, i32) {
    %c0_i32 = arith.constant 0 : i32
    %c0_i32_0 = arith.constant 0 : i32
    %c0_i32_1 = arith.constant 0 : i32
    %c0_i32_2 = arith.constant 0 : i32
    return %c0_i32, %c0_i32_0, %c0_i32_1 : i32, i32, i32
  }
  func.func @transform_9(%arg0: i32) -> (i32, i32, i32) {
    %c0_i32 = arith.constant 0 : i32
    %c0_i32_0 = arith.constant 0 : i32
    %c0_i32_1 = arith.constant 0 : i32
    %c0_i32_2 = arith.constant 0 : i32
    return %c0_i32, %c0_i32_0, %c0_i32_1 : i32, i32, i32
  }
  func.func @transform_10(%arg0: i32) -> (i32, i32, i32) {
    %c0_i32 = arith.constant 0 : i32
    %c0_i32_0 = arith.constant 0 : i32
    %c0_i32_1 = arith.constant 0 : i32
    %c0_i32_2 = arith.constant 0 : i32
    return %c0_i32, %c0_i32_0, %c0_i32_1 : i32, i32, i32
  }
  func.func @transform_11(%arg0: i32) -> (i32, i32) {
    %c0_i32 = arith.constant 0 : i32
    %c0_i32_0 = arith.constant 0 : i32
    return %arg0, %c0_i32 : i32, i32
  }
}

</mosaic_0001>

<bundles_post_ra>
// kernel: tpu_custom_call.1
= control target key start
LH: loop header
LB: loop body
LE: loop exit
PB: predicated region body
PF: predicated region fallthrough
CT: control target
= control target key end

     0   :  { %16 = vsyncpa [#allocation4], 0  ;;  %s5083_s0 = inlined_call_operand.hbm [shape: f32[16,32], index: 0, kind: input, shape index: {}]   ;;  %s5084_s1 = inlined_call_operand.vmem [shape: f32[2,32,96], index: 1, kind: input, shape index: {}]   ;;  %s5085_s2 = inlined_call_operand.vmem [shape: f32[2,32,32], index: 2, kind: input, shape index: {}]   ;;  %s5086_s3 = inlined_call_operand.vmem [shape: f32[2,1,32], index: 3, kind: input, shape index: {}]   ;;  %s5087_s4 = inlined_call_operand.vmem [shape: f32[2,1,32], index: 4, kind: input, shape index: {}]   ;;  %s5088_s5 = inlined_call_operand.vmem [shape: f32[2,32,64], index: 5, kind: input, shape index: {}]   ;;  %s5089_s6 = inlined_call_operand.vmem [shape: f32[2,1,64], index: 6, kind: input, shape index: {}]   ;;  %s5090_s7 = inlined_call_operand.vmem [shape: f32[2,64,32], index: 7, kind: input, shape index: {}]   ;;  %s5091_s8 = inlined_call_operand.vmem [shape: f32[2,1,32], index: 8, kind: input, shape index: {}]   ;;  %s5092_s9 = inlined_call_operand.vmem [shape: f32[2,1,32], index: 9, kind: input, shape index: {}]   ;;  %s5093_s10 = inlined_call_operand.vmem [shape: f32[2,1,32], index: 10, kind: input, shape index: {}]   ;;  %s5094_s11 = inlined_call_operand.hbm [shape: f32[16,32], index: 11, kind: output, shape index: {}]  }
   0x1   :  { %17 = vsyncpa [#allocation5], 0  ;;  %s4452_s17 = smov [#allocation3]   ;;  %s4404_s21 = scalar_lea.hbm %s5083_s0, 256 }
   0x2   :  { %s23_s18 = sshll.u32 %s4452_s17, 4  ;;  %p4405_p0 = scmp.ne.s32.totalorder %s5083_s0, %s4404_s21  ;;  %s24_s18 = int_to_ptr.vmem [resolvable:$true] %s23_s18 }
   0x3   :  { %p4408_p1 = scmp.lt.u32.totalorder %s4404_s21, %s5083_s0 }
   0x5   :  { %p4410_p2 = pnand %p4408_p1, %p4405_p0 }
   0x7   :  { %4413 = shalt.err (!%p4410_p2)
}
   0x8   :  { %s4414_s26 = scalar_lea.vmem %s24_s18, 256  ;;  %p4419_p4 = scmp.lt.s32.totalorder %s24_s18, %s24_s18 }
   0x9   :  { %p4415_p3 = scmp.ne.s32.totalorder %s24_s18, %s4414_s26  ;;  %p4420_p5 = scmp.lt.s32.totalorder %s4414_s26, %s4414_s26 }
   0xb   :  { %p4421_p6 = por %p4420_p5, %p4419_p4 }
   0xd   :  { %p4422_p7 = pnand %p4421_p6, %p4415_p3 }
   0xf   :  { %4425 = shalt.err (!%p4422_p7)
}
  0x10   :  { %s5095_s27 = smov 128   ;;  %s4454_s28 = smov 8  }
  0x11   :  { %29 = dma.hbm_to_vmem [thread:$0]  %s5083_s0, 256, %s24_s18, [#allocation4], %s5095_s27, %s5095_s27, %s4454_s28  }
  0x12   :  { %4448 = dma.done.wait [#allocation4], 256  }
  0x13   :  { %4449 = vsyncadd [#allocation4], 4294967040  ;;  %vm59_vm0 = vcmask 261120   ;;  %v55_v0 = vld [vmem:[%s5084_s1] sm:$0xff]  ;;  %v56_v1 = vld [vmem:[%s5084_s1 + $0x8] sm:$0xff]  ;;  %v4455_v8 = vmov 0.0  }
  0x14   :  { %v57_v2 = vld [vmem:[%s5084_s1 + $0x10] sm:$0xff]  ;;  %v4217_v3 = vpack.c.bf16 %v56_v1, %v55_v0  ;;  %v58_v4 = vld [vmem:[%s5084_s1 + $0x18] sm:$0xff]  ;;  %3974 = vmatprep.subr.mxu0 %v4455_v8  ;;  %vm4456_vm1 = vmmov 0   ;;  %s4457_s0 = smov 96   ;;  %vm144_vm2 = vcmask 64512   ;;  %s4458_s18 = smov 64  }
  0x15   :  { %v4558_v5 = vld [vmem:[#allocation3] sm:$0xff]  ;;  %v4221_v6 = vpack.c.bf16 %v58_v4, %v57_v2  ;;  %v4562_v7 = vld [vmem:[#allocation3 + $0x8] sm:$0xff]  ;;  %3976 = vmatprep.mubr.msk.f32.mxu0 %vm4456_vm1, %v4455_v8  ;;  %s4459_s21 = smov 88   ;;  %s4460_s22 = smov 120   ;;  %vm814_vm3 = vcmask 130112   ;;  %vm1157_vm4 = vcmask 195712  }
  0x16   :  { %3961 = vmatprep.mubr.msk.f32.mxu1 %vm59_vm0, %v4558_v5  ;;  %4218 = vmatprep.subr.bf16.mxu1 %v4217_v3  ;;  %s4461_s23 = smov 56   ;;  %s4462_s24 = smov 80   ;;  %vm1500_vm5 = vcmask 261312   ;;  %vm1754_vm6 = vcmask 523264  }
  0x17   :  { %4220 = vmatpush3.bf16.msra.mxu1 %v4217_v3  ;;  %s4463_s25 = smov 112   ;;  %s4464_s26 = smov 48  }
  0x18   :  { %4222 = vmatprep.subr.bf16.mxu1 %v4221_v6  ;;  %s4465_s29 = smov 72   ;;  %s4466_s30 = smov 104  }
  0x19   :  { %s4467_s12 = smov 40   ;;  %s5096_s13 = smov 16  }
  0x1a   :  { %s5098_s14 = smov 24  }
  0x1b   :  { %4224 = vmatpush3.bf16.msra.mxu1 %v4221_v6 }
  0x1c   :  { %3964 = vmatprep.subr.mxu1 %v4455_v8 }
  0x1e   :  { %3962 = vmatmul.mubr.msk.f32.vlgmr.msra.gmra.mrb[0].mxu1 %vm59_vm0, %v4562_v7 }
  0x1f   :  { %3966 = vmatprep.mubr.msk.f32.mxu1 %vm4456_vm1, %v4455_v8 }
  0xf1   :  { %v4572_v9 = vpop.f32.mrb[0].mxu1 }
  0xf2   :  { %v4574_v10 = vpop.f32.mrb[1].mxu1 }
  0xf3   :  { %142 = vrot.lane.b32.xlu0 %v4574_v10, %s4457_s0 }
  0xf7   :  { %220 = vrot.lane.b32.xlu0 %v4572_v9, %s4457_s0 }
 0x165   :  { %v143_v11 = vpop.permute.xlu0 %142 }
 0x166   :  { %3965 = vmatpush3.xpose.msk.msra.mxu1 %vm144_vm2, %v143_v11 }
 0x167   :  { %3969 = vmatprep.subr.mxu1 %v4455_v8 }
 0x169   :  { %3967 = vmatmul.mubr.msk.f32.vlgmr.msra.gmra.mrb[2].mxu1 %vm144_vm2, %v4574_v10  ;;  %v221_v12 = vpop.permute.xlu0 %220 }
 0x16a   :  { %3970 = vmatpush3.xpose.msk.msra.mxu1 %vm144_vm2, %v221_v12  ;;  %3971 = vmatprep.mubr.msk.f32.mxu1 %vm4456_vm1, %v4455_v8 }
 0x16b   :  { %3979 = vmatprep.subr.mxu1 %v4455_v8 }
 0x16d   :  { %3972 = vmatmul.mubr.msk.f32.vlgmr.msra.gmra.mrb[4].mxu1 %vm144_vm2, %v4572_v9 }
 0x16e   :  { %3981 = vmatprep.mubr.msk.f32.mxu1 %vm4456_vm1, %v4455_v8 }
 0x23c   :  { %v215_v13 = vpop.f32.mrb[2].mxu1 }
 0x23d   :  { %v296_v14 = vmul.f32 0.35355338, %v215_v13  ;;  %v3968_v15 = vpop.f32.mrb[3].mxu1 }
 0x23f   :  { %v298_v16 = vsel %vm144_vm2, %v296_v14, -inf }
 0x240   :  { %299 = vmax.xlane.f32.xlu1 %v298_v16  ;;  %v292_v17 = vpop.f32.mrb[4].mxu1 }
 0x241   :  { %v297_v18 = vmul.f32 0.35355338, %v292_v17  ;;  %v3973_v19 = vpop.f32.mrb[5].mxu1 }
 0x243   :  { %v301_v20 = vsel %vm144_vm2, %v297_v18, -inf }
 0x244   :  { %302 = vmax.xlane.f32.xlu1 %v301_v20 }
 0x255   :  { %320 = vrot.lane.b32.xlu1 %v4574_v10, %s4458_s18 }
 0x259   :  { %396 = vrot.lane.b32.xlu1 %v4572_v9, %s4458_s18 }
 0x25d   :  { %476 = vrot.lane.b32.xlu1 %v4574_v10, %s4459_s21 }
 0x261   :  { %554 = vrot.lane.b32.xlu1 %v4572_v9, %s4459_s21 }
 0x2cd   :  { %v300_v21 = vpop.xlane.xlu1 %299 }
 0x2ce   :  { %v304_v22 = vsub.f32 %v296_v14, %v300_v21 }
 0x2d0   :  { %v306_v23 = vmul.f32 1.442695, %v304_v22 }
 0x2d1   :  { %v303_v24 = vpop.xlane.xlu1 %302 }
 0x2d2   :  { %4316 = vpow2.f32 %v306_v23  ;;  %v305_v25 = vsub.f32 %v297_v18, %v303_v24 }
 0x2d4   :  { %v308_v26 = vmul.f32 1.442695, %v305_v25 }
 0x2d5   :  { %v321_v27 = vpop.permute.xlu1 %320 }
 0x2d6   :  { %4318 = vpow2.f32 %v308_v26  ;;  %3975 = vmatpush3.msra.mxu0 %v321_v27 }
 0x2d7   :  { %3984 = vmatprep.subr.mxu0 %v4455_v8 }
 0x2d9   :  { %v397_v28 = vpop.permute.xlu1 %396 }
 0x2da   :  { %3980 = vmatpush3.msra.mxu1 %v397_v28 }
 0x2db   :  { %3989 = vmatprep.subr.mxu1 %v4455_v8 }
 0x2dc   :  { %v4317_v29 = vpop.eup %4316 }
 0x2dd   :  { %v310_v30 = vsel %vm144_vm2, %v4317_v29, 0.0  ;;  %v477_v33 = vpop.permute.xlu1 %476 }
 0x2de   :  { %311 = vadd.xlane.f32.xlu0 %v310_v30 }
 0x2e0   :  { %v4319_v31 = vpop.eup %4318 }
 0x2e1   :  { %v313_v32 = vsel %vm144_vm2, %v4319_v31, 0.0  ;;  %v555_v34 = vpop.permute.xlu1 %554 }
 0x2e2   :  { %314 = vadd.xlane.f32.xlu1 %v313_v32 }
 0x2f3   :  { %552 = vrot.lane.b32.xlu1 %v4572_v9, %s4460_s22 }
 0x2f4   :  { %474 = vrot.lane.b32.xlu0 %v4574_v10, %s4460_s22 }
 0x36b   :  { %v312_v35 = vpop.xlane.xlu0 %311 }
 0x36c   :  { %4320 = vrcp.f32 %v312_v35 }
 0x36f   :  { %v315_v36 = vpop.xlane.xlu1 %314  ;;  %v475_v41 = vpop.permute.xlu0 %474 }
 0x370   :  { %4322 = vrcp.f32 %v315_v36 }
 0x373   :  { %v553_v42 = vpop.permute.xlu1 %552 }
 0x376   :  { %v4321_v37 = vpop.eup %4320 }
 0x377   :  { %v318_v38 = vmul.f32 %v4321_v37, %v4317_v29 }
 0x379   :  { %3977 = vmatmul.mubr.msk.f32.vlgmr.msra.gmra.mrb[0].mxu0 %vm144_vm2, %v318_v38 }
 0x37a   :  { %v4323_v39 = vpop.eup %4322  ;;  %3985 = vmatpush3.xpose.msk.msra.mxu0 %vm144_vm2, %v477_v33  ;;  %3986 = vmatprep.mubr.msk.f32.mxu0 %vm4456_vm1, %v4455_v8 }
 0x37b   :  { %v319_v40 = vmul.f32 %v4323_v39, %v4319_v31  ;;  %3994 = vmatprep.subr.mxu0 %v4455_v8 }
 0x37d   :  { %3982 = vmatmul.mubr.msk.f32.vlgmr.msra.gmra.mrb[6].mxu1 %vm144_vm2, %v319_v40  ;;  %3987 = vmatmul.mubr.msk.f32.vlgmr.msra.gmra.mrb[2].mxu0 %vm144_vm2, %v475_v41 }
 0x37e   :  { %3990 = vmatpush3.xpose.msk.msra.mxu1 %vm144_vm2, %v555_v34  ;;  %3991 = vmatprep.mubr.msk.f32.mxu1 %vm4456_vm1, %v4455_v8 }
 0x37f   :  { %3999 = vmatprep.subr.mxu1 %v4455_v8  ;;  %3996 = vmatprep.mubr.msk.f32.mxu0 %vm4456_vm1, %v4455_v8 }
 0x381   :  { %3992 = vmatmul.mubr.msk.f32.vlgmr.msra.gmra.mrb[8].mxu1 %vm144_vm2, %v553_v42 }
 0x382   :  { %4001 = vmatprep.mubr.msk.f32.mxu1 %vm4456_vm1, %v4455_v8 }
 0x44c   :  { %v392_v43 = vpop.f32.mrb[0].mxu0 }
 0x44d   :  { %472 = vst.msk [vmem:[#allocation2] sm:$0xff] %vm144_vm2, %v392_v43  ;;  %v3978_v44 = vpop.f32.mrb[1].mxu0 }
 0x450   :  { %v468_v45 = vpop.f32.mrb[6].mxu1  ;;  %v548_v46 = vpop.f32.mrb[2].mxu0 }
 0x451   :  { %473 = vst.msk [vmem:[#allocation2 + $0x8] sm:$0xff] %vm144_vm2, %v468_v45  ;;  %v630_v47 = vmul.f32 0.35355338, %v548_v46  ;;  %v3983_v48 = vpop.f32.mrb[7].mxu1  ;;  %v3988_v49 = vpop.f32.mrb[3].mxu0 }
 0x453   :  { %v632_v50 = vsel %vm144_vm2, %v630_v47, -inf }
 0x454   :  { %v626_v51 = vpop.f32.mrb[8].mxu1  ;;  %633 = vmax.xlane.f32.xlu1 %v632_v50 }
 0x455   :  { %v631_v52 = vmul.f32 0.35355338, %v626_v51  ;;  %v3993_v53 = vpop.f32.mrb[9].mxu1 }
 0x457   :  { %v635_v54 = vsel %vm144_vm2, %v631_v52, -inf }
 0x458   :  { %636 = vmax.xlane.f32.xlu0 %v635_v54 }
 0x465   :  { %654 = vrot.lane.b32.xlu1 %v4574_v10, %s4461_s23 }
 0x469   :  { %819 = vrot.lane.b32.xlu1 %v4574_v10, %s4462_s24 }
 0x46d   :  { %897 = vrot.lane.b32.xlu1 %v4572_v9, %s4462_s24 }
 0x46e   :  { %730 = vrot.lane.b32.xlu0 %v4572_v9, %s4461_s23 }
 0x472   :  { %817 = vrot.lane.b32.xlu0 %v4574_v10, %s4463_s25 }
 0x4e1   :  { %v634_v55 = vpop.xlane.xlu1 %633 }
 0x4e2   :  { %v638_v56 = vsub.f32 %v630_v47, %v634_v55 }
 0x4e4   :  { %v640_v57 = vmul.f32 1.442695, %v638_v56 }
 0x4e5   :  { %v655_v58 = vpop.permute.xlu1 %654  ;;  %v637_v59 = vpop.xlane.xlu0 %636 }
 0x4e6   :  { %4324 = vpow2.f32 %v640_v57  ;;  %v639_v60 = vsub.f32 %v631_v52, %v637_v59  ;;  %3995 = vmatpush3.msra.mxu0 %v655_v58 }
 0x4e7   :  { %4004 = vmatprep.subr.mxu0 %v4455_v8 }
 0x4e8   :  { %v642_v61 = vmul.f32 1.442695, %v639_v60 }
 0x4e9   :  { %v731_v62 = vpop.permute.xlu0 %730  ;;  %v820_v3 = vpop.permute.xlu1 %819 }
 0x4ea   :  { %4326 = vpow2.f32 %v642_v61  ;;  %4000 = vmatpush3.msra.mxu1 %v731_v62 }
 0x4eb   :  { %4009 = vmatprep.subr.mxu1 %v4455_v8 }
 0x4ed   :  { %v898_v4 = vpop.permute.xlu1 %897  ;;  %v818_v16 = vpop.permute.xlu0 %817 }
 0x4f0   :  { %v4325_v63 = vpop.eup %4324 }
 0x4f1   :  { %v644_v0 = vsel %vm144_vm2, %v4325_v63, 0.0 }
 0x4f2   :  { %645 = vadd.xlane.f32.xlu1 %v644_v0 }
 0x4f4   :  { %v4327_v1 = vpop.eup %4326 }
 0x4f5   :  { %v647_v2 = vsel %vm144_vm2, %v4327_v1, 0.0 }
 0x4f6   :  { %648 = vadd.xlane.f32.xlu1 %v647_v2 }
 0x507   :  { %895 = vrot.lane.b32.xlu1 %v4572_v9, %s4463_s25 }
 0x57f   :  { %v646_v6 = vpop.xlane.xlu1 %645 }
 0x580   :  { %4328 = vrcp.f32 %v646_v6 }
 0x583   :  { %v649_v11 = vpop.xlane.xlu1 %648 }
 0x584   :  { %4330 = vrcp.f32 %v649_v11 }
 0x587   :  { %v896_v17 = vpop.permute.xlu1 %895 }
 0x58a   :  { %v4329_v12 = vpop.eup %4328 }
 0x58b   :  { %v652_v13 = vmul.f32 %v4329_v12, %v4325_v63 }
 0x58d   :  { %3997 = vmatmul.mubr.msk.f32.vlgmr.msra.gmra.mrb[4].mxu0 %vm144_vm2, %v652_v13 }
 0x58e   :  { %v4331_v14 = vpop.eup %4330  ;;  %4005 = vmatpush3.xpose.msk.msra.mxu0 %vm144_vm2, %v820_v3  ;;  %4006 = vmatprep.mubr.msk.f32.mxu0 %vm4456_vm1, %v4455_v8 }
 0x58f   :  { %v653_v15 = vmul.f32 %v4331_v14, %v4327_v1  ;;  %4014 = vmatprep.subr.mxu0 %v4455_v8 }
 0x591   :  { %4002 = vmatmul.mubr.msk.f32.vlgmr.msra.gmra.mrb[10].mxu1 %vm144_vm2, %v653_v15  ;;  %4007 = vmatmul.mubr.msk.f32.vlgmr.msra.gmra.mrb[6].mxu0 %vm144_vm2, %v818_v16 }
 0x592   :  { %4010 = vmatpush3.xpose.msk.msra.mxu1 %vm144_vm2, %v898_v4  ;;  %4011 = vmatprep.mubr.msk.f32.mxu1 %vm4456_vm1, %v4455_v8 }
 0x593   :  { %4019 = vmatprep.subr.mxu1 %v4455_v8  ;;  %4016 = vmatprep.mubr.msk.f32.mxu0 %vm4456_vm1, %v4455_v8 }
 0x595   :  { %4012 = vmatmul.mubr.msk.f32.vlgmr.msra.gmra.mrb[12].mxu1 %vm144_vm2, %v896_v17 }
 0x596   :  { %4021 = vmatprep.mubr.msk.f32.mxu1 %vm4456_vm1, %v4455_v8 }
 0x660   :  { %v4662_v18 = vpop.f32.mrb[4].mxu0 }
 0x661   :  { %v3998_v19 = vpop.f32.mrb[5].mxu0 }
 0x664   :  { %v4664_v20 = vpop.f32.mrb[10].mxu1  ;;  %v891_v21 = vpop.f32.mrb[6].mxu0 }
 0x665   :  { %v973_v22 = vmul.f32 0.35355338, %v891_v21  ;;  %v4003_v23 = vpop.f32.mrb[11].mxu1  ;;  %v4008_v24 = vpop.f32.mrb[7].mxu0 }
 0x667   :  { %v975_v25 = vsel %vm144_vm2, %v973_v22, -inf }
 0x668   :  { %v969_v26 = vpop.f32.mrb[12].mxu1  ;;  %976 = vmax.xlane.f32.xlu0 %v975_v25 }
 0x669   :  { %v974_v27 = vmul.f32 0.35355338, %v969_v26  ;;  %v4013_v28 = vpop.f32.mrb[13].mxu1  ;;  %v1506_v26 = vld [vmem:[%s5085_s2 + $0x8] sm:$0xff] }
 0x66a   :  { %v1507_v28 = vld [vmem:[%s5085_s2 + $0x10] sm:$0xff] }
 0x66b   :  { %v978_v29 = vsel %vm144_vm2, %v974_v27, -inf }
 0x66c   :  { %979 = vmax.xlane.f32.xlu1 %v978_v29  ;;  %v1508_v29 = vld [vmem:[%s5085_s2 + $0x18] sm:$0xff] }
 0x67d   :  { %997 = vrot.lane.b32.xlu1 %v4574_v10, %s4464_s26 }
 0x67e   :  { %1073 = vrot.lane.b32.xlu0 %v4572_v9, %s4464_s26 }
 0x681   :  { %1162 = vrot.lane.b32.xlu1 %v4574_v10, %s4465_s29 }
 0x685   :  { %1240 = vrot.lane.b32.xlu1 %v4572_v9, %s4465_s29 }
 0x689   :  { %1238 = vrot.lane.b32.xlu1 %v4572_v9, %s4466_s30 }
 0x6f5   :  { %v977_v30 = vpop.xlane.xlu0 %976 }
 0x6f6   :  { %v981_v31 = vsub.f32 %v973_v22, %v977_v30  ;;  %v4229_v30 = vpack.c.bf16 %v1508_v29, %v1507_v28 }
 0x6f8   :  { %v983_v32 = vmul.f32 1.442695, %v981_v31 }
 0x6f9   :  { %v980_v33 = vpop.xlane.xlu1 %979  ;;  %v1074_v34 = vpop.permute.xlu0 %1073 }
 0x6fa   :  { %4332 = vpow2.f32 %v983_v32  ;;  %v982_v35 = vsub.f32 %v974_v27, %v980_v33  ;;  %4020 = vmatpush3.msra.mxu1 %v1074_v34 }
 0x6fb   :  { %4029 = vmatprep.subr.mxu1 %v4455_v8 }
 0x6fc   :  { %v985_v36 = vmul.f32 1.442695, %v982_v35 }
 0x6fd   :  { %v998_v37 = vpop.permute.xlu1 %997 }
 0x6fe   :  { %4334 = vpow2.f32 %v985_v36  ;;  %4015 = vmatpush3.msra.mxu0 %v998_v37 }
 0x6ff   :  { %4024 = vmatprep.subr.mxu0 %v4455_v8 }
 0x701   :  { %v1163_v44 = vpop.permute.xlu1 %1162 }
 0x704   :  { %v4333_v38 = vpop.eup %4332 }
 0x705   :  { %v987_v39 = vsel %vm144_vm2, %v4333_v38, 0.0  ;;  %v1241_v48 = vpop.permute.xlu1 %1240 }
 0x706   :  { %988 = vadd.xlane.f32.xlu0 %v987_v39 }
 0x708   :  { %v4335_v40 = vpop.eup %4334 }
 0x709   :  { %v990_v41 = vsel %vm144_vm2, %v4335_v40, 0.0  ;;  %v1239_v51 = vpop.permute.xlu1 %1238 }
 0x70a   :  { %991 = vadd.xlane.f32.xlu0 %v990_v41 }
 0x720   :  { %1160 = vrot.lane.b32.xlu0 %v4574_v10, %s4466_s30 }
 0x793   :  { %v989_v42 = vpop.xlane.xlu0 %988 }
 0x794   :  { %4336 = vrcp.f32 %v989_v42 }
 0x797   :  { %v992_v43 = vpop.xlane.xlu0 %991 }
 0x798   :  { %4338 = vrcp.f32 %v992_v43 }
 0x79b   :  { %v1161_v50 = vpop.permute.xlu0 %1160 }
 0x79e   :  { %v4337_v45 = vpop.eup %4336 }
 0x79f   :  { %v995_v46 = vmul.f32 %v4337_v45, %v4333_v38 }
 0x7a1   :  { %4017 = vmatmul.mubr.msk.f32.vlgmr.msra.gmra.mrb[8].mxu0 %vm144_vm2, %v995_v46 }
 0x7a2   :  { %v4339_v47 = vpop.eup %4338  ;;  %4025 = vmatpush3.xpose.msk.msra.mxu0 %vm144_vm2, %v1163_v44  ;;  %4026 = vmatprep.mubr.msk.f32.mxu0 %vm4456_vm1, %v4455_v8 }
 0x7a3   :  { %v996_v49 = vmul.f32 %v4339_v47, %v4335_v40  ;;  %4034 = vmatprep.subr.mxu0 %v4455_v8 }
 0x7a5   :  { %4022 = vmatmul.mubr.msk.f32.vlgmr.msra.gmra.mrb[14].mxu1 %vm144_vm2, %v996_v49  ;;  %4027 = vmatmul.mubr.msk.f32.vlgmr.msra.gmra.mrb[10].mxu0 %vm144_vm2, %v1161_v50 }
 0x7a6   :  { %4030 = vmatpush3.xpose.msk.msra.mxu1 %vm144_vm2, %v1241_v48  ;;  %4031 = vmatprep.mubr.msk.f32.mxu1 %vm4456_vm1, %v4455_v8 }
 0x7a7   :  { %4039 = vmatprep.subr.mxu1 %v4455_v8  ;;  %4036 = vmatprep.mubr.msk.f32.mxu0 %vm4456_vm1, %v4455_v8 }
 0x7a9   :  { %4032 = vmatmul.mubr.msk.f32.vlgmr.msra.gmra.mrb[16].mxu1 %vm144_vm2, %v1239_v51 }
 0x7aa   :  { %4041 = vmatprep.mubr.msk.f32.mxu1 %vm4456_vm1, %v4455_v8 }
 0x874   :  { %v1069_v52 = vpop.f32.mrb[8].mxu0 }
 0x875   :  { %v4018_v53 = vpop.f32.mrb[9].mxu0 }
 0x878   :  { %v1145_v54 = vpop.f32.mrb[14].mxu1  ;;  %v1234_v55 = vpop.f32.mrb[10].mxu0 }
 0x879   :  { %v1316_v56 = vmul.f32 0.35355338, %v1234_v55  ;;  %v4023_v57 = vpop.f32.mrb[15].mxu1  ;;  %v4028_v58 = vpop.f32.mrb[11].mxu0 }
 0x87a   :  { %v1640_v57 = vld [vmem:[%s5088_s5 + $0x18] sm:$0xff] }
 0x87b   :  { %v1318_v59 = vsel %vm144_vm2, %v1316_v56, -inf }
 0x87c   :  { %v1312_v60 = vpop.f32.mrb[16].mxu1  ;;  %1319 = vmax.xlane.f32.xlu0 %v1318_v59 }
 0x87d   :  { %v1317_v61 = vmul.f32 0.35355338, %v1312_v60  ;;  %v4033_v62 = vpop.f32.mrb[17].mxu1 }
 0x87f   :  { %v1321_v63 = vsel %vm144_vm2, %v1317_v61, -inf }
 0x880   :  { %1322 = vmax.xlane.f32.xlu1 %v1321_v63 }
 0x891   :  { %1340 = vrot.lane.b32.xlu1 %v4574_v10, %s4467_s12 }
 0x895   :  { %808 = vrot.lane.b32.xlu1 %v4662_v18, %s4454_s28 }
 0x899   :  { %810 = vrot.lane.b32.xlu1 %v4664_v20, %s4454_s28 }
 0x89d   :  { %1153 = vrot.lane.b32.xlu1 %v1145_v54, %s5096_s13  ;;  %v1638_v54 = vld [vmem:[%s5088_s5 + $0x8] sm:$0xff] }
 0x909   :  { %v1320_v0 = vpop.xlane.xlu0 %1319 }
 0x90a   :  { %v1324_v1 = vsub.f32 %v1316_v56, %v1320_v0  ;;  %v1639_v56 = vld [vmem:[%s5088_s5 + $0x10] sm:$0xff] }
 0x90b   :  { %v4237_v58 = vpack.c.bf16 %v1640_v57, %v1639_v56 }
 0x90c   :  { %v1326_v2 = vmul.f32 1.442695, %v1324_v1 }
 0x90d   :  { %v1323_v3 = vpop.xlane.xlu1 %1322 }
 0x90e   :  { %4340 = vpow2.f32 %v1326_v2  ;;  %v1325_v4 = vsub.f32 %v1317_v61, %v1323_v3  ;;  %v3759_v2 = vld [vmem:[%s5086_s3] ss:$0 sm:$0xff] }
 0x910   :  { %v1328_v6 = vmul.f32 1.442695, %v1325_v4  ;;  %v3760_v4 = vld [vmem:[%s5087_s4] ss:$0 sm:$0xff] }
 0x911   :  { %v1341_v11 = vpop.permute.xlu1 %1340 }
 0x912   :  { %4342 = vpow2.f32 %v1328_v6  ;;  %4035 = vmatpush3.msra.mxu0 %v1341_v11 }
 0x915   :  { %v809_v10 = vpop.permute.xlu1 %808 }
 0x916   :  { %815 = vst.msk [vmem:[#allocation2] sm:$0xff] %vm814_vm3, %v809_v10 }
 0x918   :  { %v4341_v12 = vpop.eup %4340 }
 0x919   :  { %v811_v13 = vpop.permute.xlu1 %810  ;;  %v1330_v14 = vsel %vm144_vm2, %v4341_v12, 0.0 }
 0x91a   :  { %816 = vst.msk [vmem:[#allocation2 + $0x8] sm:$0xff] %vm814_vm3, %v811_v13  ;;  %1331 = vadd.xlane.f32.xlu0 %v1330_v14 }
 0x91c   :  { %v4343_v15 = vpop.eup %4342 }
 0x91d   :  { %v1154_v16 = vpop.permute.xlu1 %1153  ;;  %v1333_v17 = vsel %vm144_vm2, %v4343_v15, 0.0 }
 0x91e   :  { %1159 = vst.msk [vmem:[#allocation2 + $0x8] sm:$0xff] %vm1157_vm4, %v1154_v16  ;;  %1334 = vadd.xlane.f32.xlu0 %v1333_v17  ;;  %v1740_v16 = vld [vmem:[%s5090_s7 + $0x8] sm:$0xff] }
 0x934   :  { %1416 = vrot.lane.b32.xlu0 %v4572_v9, %s4467_s12  ;;  %v1505_v9 = vld [vmem:[%s5085_s2] sm:$0xff] }
 0x935   :  { %v4225_v27 = vpack.c.bf16 %v1506_v26, %v1505_v9  ;;  %v3761_v26 = vld [vmem:[%s5089_s6] ss:$0 sm:$0xff] }
 0x937   :  { %4226 = vmatprep.subr.bf16.mxu0 %v4225_v27 }
 0x938   :  { %1151 = vrot.lane.b32.xlu0 %v1069_v52, %s5096_s13 }
 0x9a7   :  { %v1332_v18 = vpop.xlane.xlu0 %1331 }
 0x9a8   :  { %4344 = vrcp.f32 %v1332_v18  ;;  %v1741_v18 = vld [vmem:[%s5090_s7 + $0x10] sm:$0xff] }
 0x9ab   :  { %v1335_v19 = vpop.xlane.xlu0 %1334 }
 0x9ac   :  { %4346 = vrcp.f32 %v1335_v19  ;;  %v1742_v19 = vld [vmem:[%s5090_s7 + $0x18] sm:$0xff] }
 0x9af   :  { %v1417_v20 = vpop.permute.xlu0 %1416 }
 0x9b0   :  { %4040 = vmatpush3.msra.mxu1 %v1417_v20  ;;  %v4245_v20 = vpack.c.bf16 %v1742_v19, %v1741_v18 }
 0x9b2   :  { %v4345_v21 = vpop.eup %4344 }
 0x9b3   :  { %v1338_v22 = vmul.f32 %v4345_v21, %v4341_v12  ;;  %v1152_v23 = vpop.permute.xlu0 %1151  ;;  %v1743_v21 = vld [vmem:[%s5090_s7 + $0x20] sm:$0xff] }
 0x9b4   :  { %1158 = vst.msk [vmem:[#allocation2] sm:$0xff] %vm1157_vm4, %v1152_v23 }
 0x9b5   :  { %4037 = vmatmul.mubr.msk.f32.vlgmr.msra.gmra.mrb[12].mxu0 %vm144_vm2, %v1338_v22  ;;  %v1744_v22 = vld [vmem:[%s5090_s7 + $0x28] sm:$0xff] }
 0x9b6   :  { %v4347_v24 = vpop.eup %4346  ;;  %4228 = vmatpush3.bf16.msra.mxu0 %v4225_v27  ;;  %v4249_v23 = vpack.c.bf16 %v1744_v22, %v1743_v21 }
 0x9b7   :  { %v1339_v25 = vmul.f32 %v4347_v24, %v4343_v15  ;;  %4230 = vmatprep.subr.bf16.mxu0 %v4229_v30  ;;  %v1739_v15 = vld [vmem:[%s5090_s7] sm:$0xff]  ;;  %v1745_v24 = vld [vmem:[%s5090_s7 + $0x30] sm:$0xff] }
 0x9b8   :  { %v4241_v17 = vpack.c.bf16 %v1740_v16, %v1739_v15  ;;  %v3768_v16 = vld [vmem:[%s5093_s10] ss:$0 sm:$0xff] }
 0x9b9   :  { %4042 = vmatmul.mubr.msk.f32.vlgmr.msra.gmra.mrb[18].mxu1 %vm144_vm2, %v1339_v25  ;;  %v1746_v25 = vld [vmem:[%s5090_s7 + $0x38] sm:$0xff] }
 0x9ba   :  { %4232 = vmatpush3.bf16.msra.mxu0 %v4229_v30  ;;  %v4253_v9 = vpack.c.bf16 %v1746_v25, %v1745_v24 }
 0x9bb   :  { %4242 = vmatprep.subr.bf16.mxu0 %v4241_v17 }
 0xa88   :  { %v1412_v31 = vpop.f32.mrb[12].mxu0 }
 0xa89   :  { %1494 = vrot.lane.b32.xlu0 %v1412_v31, %s5098_s14  ;;  %v4038_v32 = vpop.f32.mrb[13].mxu0 }
 0xa8c   :  { %v1488_v33 = vpop.f32.mrb[18].mxu1 }
 0xa8d   :  { %1496 = vrot.lane.b32.xlu1 %v1488_v33, %s5098_s14  ;;  %v4043_v34 = vpop.f32.mrb[19].mxu1 }
 0xafb   :  { %v1495_v35 = vpop.permute.xlu0 %1494 }
 0xafc   :  { %1501 = vst.msk [vmem:[#allocation2] sm:$0xff] %vm1500_vm5, %v1495_v35 }
 0xaff   :  { %v1497_v36 = vpop.permute.xlu1 %1496 }
 0xb00   :  { %1502 = vst.msk [vmem:[#allocation2 + $0x8] sm:$0xff] %vm1500_vm5, %v1497_v36 }
 0xb03   :  { %v1503_v37 = vld [vmem:[#allocation2] sm:$0xff] }
 0xb04   :  { %4052 = vmatprep.mubr.msk.f32.mxu0 %vm59_vm0, %v1503_v37 }
 0xb07   :  { %v1504_v38 = vld [vmem:[#allocation2 + $0x8] sm:$0xff] }
 0xb08   :  { %4053 = vmatmul.mubr.msk.f32.vlgmr.msra.gmra.mrb[14].mxu0 %vm59_vm0, %v1504_v38 }
 0xb09   :  { %4244 = vmatpush3.bf16.msra.mxu0 %v4241_v17 }
 0xb0a   :  { %4246 = vmatprep.subr.bf16.mxu0 %v4245_v20 }
 0xb0d   :  { %4248 = vmatpush3.bf16.msra.mxu0 %v4245_v20 }
 0xb0e   :  { %4250 = vmatprep.subr.bf16.mxu0 %v4249_v23 }
 0xb11   :  { %4252 = vmatpush3.bf16.msra.mxu0 %v4249_v23 }
 0xb12   :  { %4254 = vmatprep.subr.bf16.mxu0 %v4253_v9 }
 0xb15   :  { %4256 = vmatpush3.bf16.msra.mxu0 %v4253_v9 }
 0xb16   :  { %4106 = vmatprep.subr.mxu0 %v4455_v8 }
 0xbdb   :  { %v4054_v39 = vpop.f32.mrb[14].mxu0 }
 0xbdc   :  { %v1591_v40 = vadd.f32 %v4054_v39, %v4562_v7  ;;  %v1581_v41 = vpop.f32.mrb[15].mxu0 }
 0xbdd   :  { %v1590_v42 = vadd.f32 %v1581_v41, %v4558_v5  ;;  %v1637_v5 = vld [vmem:[%s5088_s5] sm:$0xff] }
 0xbde   :  { %v1595_v43 = vsel %vm59_vm0, %v1591_v40, 0.0  ;;  %v4233_v55 = vpack.c.bf16 %v1638_v54, %v1637_v5  ;;  %v3764_v41 = vld [vmem:[%s5091_s8] ss:$0 sm:$0xff] }
 0xbdf   :  { %1596 = vadd.xlane.f32.xlu1 %v1595_v43  ;;  %v1592_v44 = vsel %vm59_vm0, %v1590_v42, 0.0 }
 0xbe0   :  { %1593 = vadd.xlane.f32.xlu0 %v1592_v44  ;;  %4234 = vmatprep.subr.bf16.mxu1 %v4233_v55 }
 0xbe1   :  { %4236 = vmatpush3.bf16.msra.mxu1 %v4233_v55 }
 0xbe2   :  { %4238 = vmatprep.subr.bf16.mxu1 %v4237_v58 }
 0xbe5   :  { %4240 = vmatpush3.bf16.msra.mxu1 %v4237_v58  ;;  %v3769_v58 = vld [vmem:[%s5084_s1 + $0x20] sm:$0xff] }
 0xc6c   :  { %v1597_v45 = vpop.xlane.xlu1 %1596 }
 0xc6d   :  { %v1600_v46 = vmul.f32 0.03125, %v1597_v45  ;;  %v1594_v47 = vpop.xlane.xlu0 %1593 }
 0xc6e   :  { %v1599_v48 = vmul.f32 0.03125, %v1594_v47 }
 0xc6f   :  { %v1602_v49 = vsub.f32 %v1591_v40, %v1600_v46 }
 0xc70   :  { %v1601_v50 = vsub.f32 %v1590_v42, %v1599_v48 }
 0xc71   :  { %v1604_v53 = vmul.f32 %v1602_v49, %v1602_v49 }
 0xc72   :  { %v1603_v51 = vmul.f32 %v1601_v50, %v1601_v50 }
 0xc73   :  { %v1608_v7 = vsel %vm59_vm0, %v1604_v53, 0.0 }
 0xc74   :  { %v1605_v52 = vsel %vm59_vm0, %v1603_v51, 0.0 }
 0xc75   :  { %1606 = vadd.xlane.f32.xlu0 %v1605_v52 }
 0xc79   :  { %1609 = vadd.xlane.f32.xlu0 %v1608_v7 }
 0xd02   :  { %v1607_v59 = vpop.xlane.xlu0 %1606 }
 0xd03   :  { %v1611_v60 = vmul.f32 0.03125, %v1607_v59  ;;  %v3770_v59 = vld [vmem:[%s5084_s1 + $0x28] sm:$0xff] }
 0xd05   :  { %v1613_v61 = vadd.f32 1e-05, %v1611_v60  ;;  %v4257_v60 = vpack.c.bf16 %v3770_v59, %v3769_v58 }
 0xd06   :  { %v1610_v62 = vpop.xlane.xlu0 %1609 }
 0xd07   :  { %4348 = vrsqrt.f32 %v1613_v61  ;;  %v1612_v63 = vmul.f32 0.03125, %v1610_v62  ;;  %v3771_v61 = vld [vmem:[%s5084_s1 + $0x30] sm:$0xff]  ;;  %v3772_v62 = vld [vmem:[%s5084_s1 + $0x38] sm:$0xff]  ;;  %4258 = vmatprep.subr.bf16.mxu1 %v4257_v60  ;;  %s4470_s1 = smov [#allocation6]  }
 0xd08   :  { %s3719_s15 = sshll.u32 %s4470_s1, 4  ;;  %s3720_s15 = int_to_ptr.vmem [resolvable:$true] %s3719_s15 }
 0xd09   :  { %v1614_v0 = vadd.f32 1e-05, %v1612_v63  ;;  %v4261_v63 = vpack.c.bf16 %v3772_v62, %v3771_v61  ;;  %p4431_p9 = scmp.lt.s32.totalorder %s3720_s15, %s3720_s15 }
 0xd0b   :  { %4350 = vrsqrt.f32 %v1614_v0 }
 0xd11   :  { %v4349_v1 = vpop.eup %4348 }
 0xd12   :  { %v1617_v3 = vmul.f32 %v4349_v1, %v1601_v50 }
 0xd14   :  { %v1626_v6 = vmul.f32 %v3759_v2, %v1617_v3 }
 0xd15   :  { %v4351_v11 = vpop.eup %4350 }
 0xd16   :  { %v1618_v10 = vmul.f32 %v4351_v11, %v1602_v49  ;;  %v1635_v12 = vadd.f32 %v3760_v4, %v1626_v6 }
 0xd18   :  { %v1627_v13 = vmul.f32 %v3759_v2, %v1618_v10  ;;  %4063 = vmatprep.mubr.msk.f32.mxu1 %vm59_vm0, %v1635_v12  ;;  %v3767_v10 = vld [vmem:[%s5092_s9] ss:$0 sm:$0xff] }
 0xd1a   :  { %v1636_v14 = vadd.f32 %v3760_v4, %v1627_v13 }
 0xd1c   :  { %4064 = vmatmul.mubr.msk.f32.vlgmr.msra.gmra.mrb[20].mxu1 %vm59_vm0, %v1636_v14 }
 0xd1d   :  { %4260 = vmatpush3.bf16.msra.mxu1 %v4257_v60 }
 0xd1e   :  { %4262 = vmatprep.subr.bf16.mxu1 %v4261_v63 }
 0xd21   :  { %4264 = vmatpush3.bf16.msra.mxu1 %v4261_v63 }
 0xd22   :  { %4096 = vmatprep.subr.mxu1 %v4455_v8 }
 0xdef   :  { %v4065_v27 = vpop.f32.mrb[20].mxu1 }
 0xdf0   :  { %v1726_v28 = vadd.f32 %v4065_v27, %v3761_v26  ;;  %v1720_v29 = vpop.f32.mrb[21].mxu1 }
 0xdf1   :  { %v1721_v30 = vadd.f32 %v3761_v26, %v1720_v29 }
 0xdf2   :  { %v1732_v31 = vmul.f32 0.70710677, %v1726_v28  ;;  %v1730_v38 = vmul.f32 0.5, %v1726_v28 }
 0xdf3   :  { %v1731_v32 = vmul.f32 0.70710677, %v1721_v30  ;;  %v1729_v36 = vmul.f32 0.5, %v1721_v30 }
 0xdf4   :  { %4352 = verf.f32 %v1732_v31 }
 0xdf5   :  { %4354 = verf.f32 %v1731_v32 }
 0xdfe   :  { %v4353_v33 = vpop.eup %4352 }
 0xdff   :  { %v4355_v34 = vpop.eup %4354  ;;  %v1736_v35 = vadd.f32 1.0, %v4353_v33 }
 0xe00   :  { %v1735_v37 = vadd.f32 1.0, %v4355_v34 }
 0xe01   :  { %v1738_v40 = vmul.f32 %v1736_v35, %v1730_v38 }
 0xe02   :  { %v1737_v39 = vmul.f32 %v1735_v37, %v1729_v36 }
 0xe04   :  { %4082 = vmatprep.mubr.msk.f32.mxu0 %vm1754_vm6, %v1737_v39 }
 0xe05   :  { %4083 = vmatmul.mubr.msk.f32.vlgmr.msra.gmra.mrb[16].mxu0 %vm1754_vm6, %v1738_v40 }
 0xe06   :  { %4108 = vmatprep.mubr.msk.f32.mxu0 %vm4456_vm1, %v4455_v8 }
 0xed8   :  { %v4084_v42 = vpop.f32.mrb[16].mxu0 }
 0xed9   :  { %v1833_v43 = vadd.f32 %v4084_v42, %v3764_v41  ;;  %v1827_v44 = vpop.f32.mrb[17].mxu0 }
 0xeda   :  { %v1828_v45 = vadd.f32 %v3764_v41, %v1827_v44 }
 0xedb   :  { %v1837_v46 = vadd.f32 %v1833_v43, %v1636_v14 }
 0xedc   :  { %v1836_v47 = vadd.f32 %v1828_v45, %v1635_v12 }
 0xedd   :  { %v1841_v48 = vsel %vm59_vm0, %v1837_v46, 0.0 }
 0xede   :  { %1842 = vadd.xlane.f32.xlu0 %v1841_v48  ;;  %v1838_v49 = vsel %vm59_vm0, %v1836_v47, 0.0 }
 0xedf   :  { %1839 = vadd.xlane.f32.xlu1 %v1838_v49 }
 0xf6b   :  { %v1843_v50 = vpop.xlane.xlu0 %1842 }
 0xf6c   :  { %v1845_v51 = vmul.f32 0.03125, %v1843_v50  ;;  %v1840_v52 = vpop.xlane.xlu1 %1839 }
 0xf6d   :  { %v1844_v53 = vmul.f32 0.03125, %v1840_v52 }
 0xf6e   :  { %v1847_v7 = vsub.f32 %v1837_v46, %v1845_v51 }
 0xf6f   :  { %v1846_v5 = vsub.f32 %v1836_v47, %v1844_v53 }
 0xf70   :  { %v1849_v54 = vmul.f32 %v1847_v7, %v1847_v7 }
 0xf71   :  { %v1848_v55 = vmul.f32 %v1846_v5, %v1846_v5 }
 0xf72   :  { %v1853_v56 = vsel %vm59_vm0, %v1849_v54, 0.0 }
 0xf73   :  { %1854 = vadd.xlane.f32.xlu0 %v1853_v56  ;;  %v1850_v57 = vsel %vm59_vm0, %v1848_v55, 0.0 }
 0xf74   :  { %1851 = vadd.xlane.f32.xlu1 %v1850_v57 }
0x1000   :  { %v1855_v0 = vpop.xlane.xlu0 %1854 }
0x1001   :  { %v1857_v1 = vmul.f32 0.03125, %v1855_v0  ;;  %v1852_v2 = vpop.xlane.xlu1 %1851 }
0x1002   :  { %v1856_v3 = vmul.f32 0.03125, %v1852_v2 }
0x1003   :  { %v1859_v4 = vadd.f32 1e-05, %v1857_v1 }
0x1004   :  { %v1858_v6 = vadd.f32 1e-05, %v1856_v3 }
0x1005   :  { %4356 = vrsqrt.f32 %v1859_v4 }
0x1006   :  { %4358 = vrsqrt.f32 %v1858_v6 }
0x100f   :  { %v4357_v11 = vpop.eup %4356 }
0x1010   :  { %v4359_v12 = vpop.eup %4358  ;;  %v1863_v13 = vmul.f32 %v4357_v11, %v1847_v7 }
0x1011   :  { %v1862_v14 = vmul.f32 %v4359_v12, %v1846_v5 }
0x1012   :  { %v1872_v15 = vmul.f32 %v3767_v10, %v1863_v13 }
0x1013   :  { %v1871_v17 = vmul.f32 %v3767_v10, %v1862_v14 }
0x1014   :  { %v4824_v19 = vadd.f32 %v3768_v16, %v1872_v15 }
0x1015   :  { %v4822_v18 = vadd.f32 %v3768_v16, %v1871_v17 }
0x1017   :  { %4093 = vmatprep.mubr.msk.f32.mxu1 %vm59_vm0, %v4822_v18 }
0x1018   :  { %4094 = vmatmul.mubr.msk.f32.vlgmr.msra.gmra.mrb[22].mxu1 %vm59_vm0, %v4824_v19 }
0x1019   :  { %4098 = vmatprep.mubr.msk.f32.mxu1 %vm4456_vm1, %v4455_v8 }
0x10eb   :  { %v4832_v20 = vpop.f32.mrb[22].mxu1 }
0x10ec   :  { %2046 = vrot.lane.b32.xlu0 %v4832_v20, %s4457_s0  ;;  %v4836_v21 = vpop.f32.mrb[23].mxu1 }
0x10ed   :  { %1969 = vrot.lane.b32.xlu1 %v4836_v21, %s4457_s0  ;;  %s5100_s0 = smov 16  }
0x115e   :  { %v2047_v23 = vpop.permute.xlu0 %2046 }
0x115f   :  { %v1970_v22 = vpop.permute.xlu1 %1969 }
0x1160   :  { %4097 = vmatpush3.xpose.msk.msra.mxu1 %vm144_vm2, %v1970_v22 }
0x1161   :  { %4101 = vmatprep.subr.mxu1 %v4455_v8 }
0x1163   :  { %4099 = vmatmul.mubr.msk.f32.vlgmr.msra.gmra.mrb[24].mxu1 %vm144_vm2, %v4836_v21 }
0x1164   :  { %4102 = vmatpush3.xpose.msk.msra.mxu1 %vm144_vm2, %v2047_v23  ;;  %4103 = vmatprep.mubr.msk.f32.mxu1 %vm4456_vm1, %v4455_v8 }
0x1165   :  { %4111 = vmatprep.subr.mxu1 %v4455_v8 }
0x1167   :  { %4104 = vmatmul.mubr.msk.f32.vlgmr.msra.gmra.mrb[26].mxu1 %vm144_vm2, %v4832_v20 }
0x1168   :  { %4113 = vmatprep.mubr.msk.f32.mxu1 %vm4456_vm1, %v4455_v8 }
0x1236   :  { %v2041_v24 = vpop.f32.mrb[24].mxu1 }
0x1237   :  { %v2122_v25 = vmul.f32 0.35355338, %v2041_v24  ;;  %v4100_v9 = vpop.f32.mrb[25].mxu1 }
0x1239   :  { %v2124_v26 = vsel %vm144_vm2, %v2122_v25, -inf }
0x123a   :  { %2125 = vmax.xlane.f32.xlu1 %v2124_v26  ;;  %v2118_v27 = vpop.f32.mrb[26].mxu1 }
0x123b   :  { %v2123_v28 = vmul.f32 0.35355338, %v2118_v27  ;;  %v4105_v29 = vpop.f32.mrb[27].mxu1 }
0x123d   :  { %v2127_v30 = vsel %vm144_vm2, %v2123_v28, -inf }
0x123e   :  { %2128 = vmax.xlane.f32.xlu0 %v2127_v30 }
0x124b   :  { %2146 = vrot.lane.b32.xlu1 %v4836_v21, %s4458_s18 }
0x124f   :  { %2302 = vrot.lane.b32.xlu1 %v4836_v21, %s4459_s21 }
0x1253   :  { %2380 = vrot.lane.b32.xlu1 %v4832_v20, %s4459_s21 }
0x1254   :  { %2222 = vrot.lane.b32.xlu0 %v4832_v20, %s4458_s18 }
0x12c7   :  { %v2126_v31 = vpop.xlane.xlu1 %2125 }
0x12c8   :  { %v2130_v32 = vsub.f32 %v2122_v25, %v2126_v31 }
0x12ca   :  { %v2132_v33 = vmul.f32 1.442695, %v2130_v32 }
0x12cb   :  { %v2147_v34 = vpop.permute.xlu1 %2146  ;;  %v2129_v35 = vpop.xlane.xlu0 %2128 }
0x12cc   :  { %4360 = vpow2.f32 %v2132_v33  ;;  %v2131_v36 = vsub.f32 %v2123_v28, %v2129_v35  ;;  %4107 = vmatpush3.msra.mxu0 %v2147_v34 }
0x12cd   :  { %4116 = vmatprep.subr.mxu0 %v4455_v8 }
0x12ce   :  { %v2134_v37 = vmul.f32 1.442695, %v2131_v36 }
0x12cf   :  { %v2223_v38 = vpop.permute.xlu0 %2222  ;;  %v2303_v43 = vpop.permute.xlu1 %2302 }
0x12d0   :  { %4362 = vpow2.f32 %v2134_v37  ;;  %4112 = vmatpush3.msra.mxu1 %v2223_v38 }
0x12d1   :  { %4121 = vmatprep.subr.mxu1 %v4455_v8 }
0x12d3   :  { %v2381_v44 = vpop.permute.xlu1 %2380 }
0x12d6   :  { %v4361_v39 = vpop.eup %4360 }
0x12d7   :  { %v2136_v40 = vsel %vm144_vm2, %v4361_v39, 0.0 }
0x12d8   :  { %2137 = vadd.xlane.f32.xlu1 %v2136_v40 }
0x12da   :  { %v4363_v41 = vpop.eup %4362 }
0x12db   :  { %v2139_v42 = vsel %vm144_vm2, %v4363_v41, 0.0 }
0x12dc   :  { %2140 = vadd.xlane.f32.xlu0 %v2139_v42 }
0x12e9   :  { %2378 = vrot.lane.b32.xlu1 %v4832_v20, %s4460_s22 }
0x12f2   :  { %2300 = vrot.lane.b32.xlu0 %v4836_v21, %s4460_s22 }
0x1365   :  { %v2138_v45 = vpop.xlane.xlu1 %2137 }
0x1366   :  { %4364 = vrcp.f32 %v2138_v45 }
0x1369   :  { %v2141_v46 = vpop.xlane.xlu0 %2140  ;;  %v2379_v52 = vpop.permute.xlu1 %2378 }
0x136a   :  { %4366 = vrcp.f32 %v2141_v46 }
0x136d   :  { %v2301_v51 = vpop.permute.xlu0 %2300 }
0x1370   :  { %v4365_v47 = vpop.eup %4364 }
0x1371   :  { %v2144_v48 = vmul.f32 %v4365_v47, %v4361_v39 }
0x1373   :  { %4109 = vmatmul.mubr.msk.f32.vlgmr.msra.gmra.mrb[18].mxu0 %vm144_vm2, %v2144_v48 }
0x1374   :  { %v4367_v49 = vpop.eup %4366  ;;  %4117 = vmatpush3.xpose.msk.msra.mxu0 %vm144_vm2, %v2303_v43  ;;  %4118 = vmatprep.mubr.msk.f32.mxu0 %vm4456_vm1, %v4455_v8 }
0x1375   :  { %v2145_v50 = vmul.f32 %v4367_v49, %v4363_v41  ;;  %4126 = vmatprep.subr.mxu0 %v4455_v8 }
0x1377   :  { %4114 = vmatmul.mubr.msk.f32.vlgmr.msra.gmra.mrb[28].mxu1 %vm144_vm2, %v2145_v50  ;;  %4119 = vmatmul.mubr.msk.f32.vlgmr.msra.gmra.mrb[20].mxu0 %vm144_vm2, %v2301_v51 }
0x1378   :  { %4122 = vmatpush3.xpose.msk.msra.mxu1 %vm144_vm2, %v2381_v44  ;;  %4123 = vmatprep.mubr.msk.f32.mxu1 %vm4456_vm1, %v4455_v8 }
0x1379   :  { %4131 = vmatprep.subr.mxu1 %v4455_v8  ;;  %4128 = vmatprep.mubr.msk.f32.mxu0 %vm4456_vm1, %v4455_v8 }
0x137b   :  { %4124 = vmatmul.mubr.msk.f32.vlgmr.msra.gmra.mrb[30].mxu1 %vm144_vm2, %v2379_v52 }
0x137c   :  { %4133 = vmatprep.mubr.msk.f32.mxu1 %vm4456_vm1, %v4455_v8 }
0x1446   :  { %v2218_v53 = vpop.f32.mrb[18].mxu0 }
0x1447   :  { %2298 = vst.msk [vmem:[#allocation2] sm:$0xff] %vm144_vm2, %v2218_v53  ;;  %v4110_v7 = vpop.f32.mrb[19].mxu0 }
0x144a   :  { %v2294_v5 = vpop.f32.mrb[28].mxu1  ;;  %v2374_v54 = vpop.f32.mrb[20].mxu0 }
0x144b   :  { %2299 = vst.msk [vmem:[#allocation2 + $0x8] sm:$0xff] %vm144_vm2, %v2294_v5  ;;  %v2456_v55 = vmul.f32 0.35355338, %v2374_v54  ;;  %v4115_v56 = vpop.f32.mrb[29].mxu1  ;;  %v4120_v57 = vpop.f32.mrb[21].mxu0 }
0x144d   :  { %v2458_v58 = vsel %vm144_vm2, %v2456_v55, -inf }
0x144e   :  { %2459 = vmax.xlane.f32.xlu0 %v2458_v58  ;;  %v2452_v59 = vpop.f32.mrb[30].mxu1 }
0x144f   :  { %v2457_v60 = vmul.f32 0.35355338, %v2452_v59  ;;  %v4125_v61 = vpop.f32.mrb[31].mxu1 }
0x1451   :  { %v2461_v62 = vsel %vm144_vm2, %v2457_v60, -inf }
0x1452   :  { %2462 = vmax.xlane.f32.xlu1 %v2461_v62 }
0x1463   :  { %2480 = vrot.lane.b32.xlu1 %v4836_v21, %s4461_s23 }
0x1464   :  { %2556 = vrot.lane.b32.xlu0 %v4832_v20, %s4461_s23 }
0x1467   :  { %2644 = vrot.lane.b32.xlu1 %v4836_v21, %s4462_s24 }
0x146b   :  { %2722 = vrot.lane.b32.xlu1 %v4832_v20, %s4462_s24 }
0x146f   :  { %2720 = vrot.lane.b32.xlu1 %v4832_v20, %s4463_s25 }
0x14db   :  { %v2460_v63 = vpop.xlane.xlu0 %2459 }
0x14dc   :  { %v2464_v0 = vsub.f32 %v2456_v55, %v2460_v63 }
0x14de   :  { %v2466_v1 = vmul.f32 1.442695, %v2464_v0 }
0x14df   :  { %v2557_v2 = vpop.permute.xlu0 %2556  ;;  %v2463_v3 = vpop.xlane.xlu1 %2462 }
0x14e0   :  { %4368 = vpow2.f32 %v2466_v1  ;;  %v2465_v4 = vsub.f32 %v2457_v60, %v2463_v3  ;;  %4132 = vmatpush3.msra.mxu1 %v2557_v2 }
0x14e1   :  { %4141 = vmatprep.subr.mxu1 %v4455_v8 }
0x14e2   :  { %v2468_v6 = vmul.f32 1.442695, %v2465_v4 }
0x14e3   :  { %v2481_v11 = vpop.permute.xlu1 %2480 }
0x14e4   :  { %4370 = vpow2.f32 %v2468_v6  ;;  %4127 = vmatpush3.msra.mxu0 %v2481_v11 }
0x14e5   :  { %4136 = vmatprep.subr.mxu0 %v4455_v8 }
0x14e7   :  { %v2645_v17 = vpop.permute.xlu1 %2644 }
0x14ea   :  { %v4369_v10 = vpop.eup %4368 }
0x14eb   :  { %v2470_v12 = vsel %vm144_vm2, %v4369_v10, 0.0  ;;  %v2723_v25 = vpop.permute.xlu1 %2722 }
0x14ec   :  { %2471 = vadd.xlane.f32.xlu0 %v2470_v12 }
0x14ee   :  { %v4371_v13 = vpop.eup %4370 }
0x14ef   :  { %v2473_v14 = vsel %vm144_vm2, %v4371_v13, 0.0  ;;  %v2721_v27 = vpop.permute.xlu1 %2720 }
0x14f0   :  { %2474 = vadd.xlane.f32.xlu0 %v2473_v14 }
0x1506   :  { %2642 = vrot.lane.b32.xlu0 %v4836_v21, %s4463_s25 }
0x1579   :  { %v2472_v15 = vpop.xlane.xlu0 %2471 }
0x157a   :  { %4372 = vrcp.f32 %v2472_v15 }
0x157d   :  { %v2475_v16 = vpop.xlane.xlu0 %2474 }
0x157e   :  { %4374 = vrcp.f32 %v2475_v16 }
0x1581   :  { %v2643_v26 = vpop.permute.xlu0 %2642 }
0x1584   :  { %v4373_v22 = vpop.eup %4372 }
0x1585   :  { %v2478_v23 = vmul.f32 %v4373_v22, %v4369_v10 }
0x1587   :  { %4129 = vmatmul.mubr.msk.f32.vlgmr.msra.gmra.mrb[22].mxu0 %vm144_vm2, %v2478_v23 }
0x1588   :  { %v4375_v24 = vpop.eup %4374  ;;  %4137 = vmatpush3.xpose.msk.msra.mxu0 %vm144_vm2, %v2645_v17  ;;  %4138 = vmatprep.mubr.msk.f32.mxu0 %vm4456_vm1, %v4455_v8 }
0x1589   :  { %v2479_v9 = vmul.f32 %v4375_v24, %v4371_v13  ;;  %4146 = vmatprep.subr.mxu0 %v4455_v8 }
0x158b   :  { %4134 = vmatmul.mubr.msk.f32.vlgmr.msra.gmra.mrb[32].mxu1 %vm144_vm2, %v2479_v9  ;;  %4139 = vmatmul.mubr.msk.f32.vlgmr.msra.gmra.mrb[24].mxu0 %vm144_vm2, %v2643_v26 }
0x158c   :  { %4142 = vmatpush3.xpose.msk.msra.mxu1 %vm144_vm2, %v2723_v25  ;;  %4143 = vmatprep.mubr.msk.f32.mxu1 %vm4456_vm1, %v4455_v8 }
0x158d   :  { %4151 = vmatprep.subr.mxu1 %v4455_v8  ;;  %4148 = vmatprep.mubr.msk.f32.mxu0 %vm4456_vm1, %v4455_v8 }
0x158f   :  { %4144 = vmatmul.mubr.msk.f32.vlgmr.msra.gmra.mrb[34].mxu1 %vm144_vm2, %v2721_v27 }
0x1590   :  { %4153 = vmatprep.mubr.msk.f32.mxu1 %vm4456_vm1, %v4455_v8 }
0x165a   :  { %v4922_v28 = vpop.f32.mrb[22].mxu0 }
0x165b   :  { %v4130_v29 = vpop.f32.mrb[23].mxu0 }
0x165e   :  { %v4924_v30 = vpop.f32.mrb[32].mxu1  ;;  %v2716_v31 = vpop.f32.mrb[24].mxu0 }
0x165f   :  { %v2798_v32 = vmul.f32 0.35355338, %v2716_v31  ;;  %v4135_v33 = vpop.f32.mrb[33].mxu1  ;;  %v4140_v34 = vpop.f32.mrb[25].mxu0 }
0x1661   :  { %v2800_v35 = vsel %vm144_vm2, %v2798_v32, -inf }
0x1662   :  { %2801 = vmax.xlane.f32.xlu0 %v2800_v35  ;;  %v2794_v36 = vpop.f32.mrb[34].mxu1  ;;  %v3800_v35 = vld [vmem:[%s5085_s2 + $0x28] sm:$0xff] }
0x1663   :  { %v2799_v37 = vmul.f32 0.35355338, %v2794_v36  ;;  %v4145_v38 = vpop.f32.mrb[35].mxu1 }
0x1664   :  { %v3802_v38 = vld [vmem:[%s5085_s2 + $0x38] sm:$0xff] }
0x1665   :  { %v2803_v39 = vsel %vm144_vm2, %v2799_v37, -inf }
0x1666   :  { %2804 = vmax.xlane.f32.xlu1 %v2803_v39 }
0x1677   :  { %2822 = vrot.lane.b32.xlu1 %v4836_v21, %s4464_s26 }
0x1678   :  { %2898 = vrot.lane.b32.xlu0 %v4832_v20, %s4464_s26 }
0x167b   :  { %2986 = vrot.lane.b32.xlu1 %v4836_v21, %s4465_s29 }
0x167f   :  { %3064 = vrot.lane.b32.xlu1 %v4832_v20, %s4465_s29 }
0x1683   :  { %3062 = vrot.lane.b32.xlu1 %v4832_v20, %s4466_s30 }
0x16ef   :  { %v2802_v40 = vpop.xlane.xlu0 %2801 }
0x16f0   :  { %v2806_v41 = vsub.f32 %v2798_v32, %v2802_v40 }
0x16f2   :  { %v2808_v42 = vmul.f32 1.442695, %v2806_v41 }
0x16f3   :  { %v2899_v43 = vpop.permute.xlu0 %2898  ;;  %v2805_v44 = vpop.xlane.xlu1 %2804 }
0x16f4   :  { %4376 = vpow2.f32 %v2808_v42  ;;  %v2807_v45 = vsub.f32 %v2799_v37, %v2805_v44  ;;  %4152 = vmatpush3.msra.mxu1 %v2899_v43  ;;  %v3801_v37 = vld [vmem:[%s5085_s2 + $0x30] sm:$0xff] }
0x16f5   :  { %4161 = vmatprep.subr.mxu1 %v4455_v8  ;;  %v4269_v39 = vpack.c.bf16 %v3802_v38, %v3801_v37 }
0x16f6   :  { %v2810_v46 = vmul.f32 1.442695, %v2807_v45 }
0x16f7   :  { %v2823_v47 = vpop.permute.xlu1 %2822 }
0x16f8   :  { %4378 = vpow2.f32 %v2810_v46  ;;  %4147 = vmatpush3.msra.mxu0 %v2823_v47 }
0x16f9   :  { %4156 = vmatprep.subr.mxu0 %v4455_v8 }
0x16fb   :  { %v2987_v7 = vpop.permute.xlu1 %2986 }
0x16fe   :  { %v4377_v48 = vpop.eup %4376 }
0x16ff   :  { %v2812_v49 = vsel %vm144_vm2, %v4377_v48, 0.0  ;;  %v3065_v56 = vpop.permute.xlu1 %3064 }
0x1700   :  { %2813 = vadd.xlane.f32.xlu0 %v2812_v49 }
0x1702   :  { %v4379_v50 = vpop.eup %4378 }
0x1703   :  { %v2815_v51 = vsel %vm144_vm2, %v4379_v50, 0.0  ;;  %v3063_v59 = vpop.permute.xlu1 %3062 }
0x1704   :  { %2816 = vadd.xlane.f32.xlu0 %v2815_v51 }
0x171a   :  { %2984 = vrot.lane.b32.xlu0 %v4836_v21, %s4466_s30  ;;  %s5101_s30 = smov 24  }
0x178d   :  { %v2814_v52 = vpop.xlane.xlu0 %2813 }
0x178e   :  { %4380 = vrcp.f32 %v2814_v52 }
0x1791   :  { %v2817_v53 = vpop.xlane.xlu0 %2816 }
0x1792   :  { %4382 = vrcp.f32 %v2817_v53 }
0x1795   :  { %v2985_v58 = vpop.permute.xlu0 %2984 }
0x1798   :  { %v4381_v5 = vpop.eup %4380 }
0x1799   :  { %v2820_v54 = vmul.f32 %v4381_v5, %v4377_v48 }
0x179b   :  { %4149 = vmatmul.mubr.msk.f32.vlgmr.msra.gmra.mrb[26].mxu0 %vm144_vm2, %v2820_v54 }
0x179c   :  { %v4383_v55 = vpop.eup %4382  ;;  %4157 = vmatpush3.xpose.msk.msra.mxu0 %vm144_vm2, %v2987_v7  ;;  %4158 = vmatprep.mubr.msk.f32.mxu0 %vm4456_vm1, %v4455_v8 }
0x179d   :  { %v2821_v57 = vmul.f32 %v4383_v55, %v4379_v50  ;;  %4166 = vmatprep.subr.mxu0 %v4455_v8 }
0x179f   :  { %4154 = vmatmul.mubr.msk.f32.vlgmr.msra.gmra.mrb[36].mxu1 %vm144_vm2, %v2821_v57  ;;  %4159 = vmatmul.mubr.msk.f32.vlgmr.msra.gmra.mrb[28].mxu0 %vm144_vm2, %v2985_v58 }
0x17a0   :  { %4162 = vmatpush3.xpose.msk.msra.mxu1 %vm144_vm2, %v3065_v56  ;;  %4163 = vmatprep.mubr.msk.f32.mxu1 %vm4456_vm1, %v4455_v8 }
0x17a1   :  { %4171 = vmatprep.subr.mxu1 %v4455_v8  ;;  %4168 = vmatprep.mubr.msk.f32.mxu0 %vm4456_vm1, %v4455_v8 }
0x17a3   :  { %4164 = vmatmul.mubr.msk.f32.vlgmr.msra.gmra.mrb[38].mxu1 %vm144_vm2, %v3063_v59 }
0x17a4   :  { %4173 = vmatprep.mubr.msk.f32.mxu1 %vm4456_vm1, %v4455_v8 }
0x186e   :  { %v2894_v60 = vpop.f32.mrb[26].mxu0 }
0x186f   :  { %v4150_v61 = vpop.f32.mrb[27].mxu0 }
0x1870   :  { %v3810_v61 = vld [vmem:[%s5088_s5 + $0x28] sm:$0xff] }
0x1872   :  { %v2970_v62 = vpop.f32.mrb[36].mxu1  ;;  %v3058_v63 = vpop.f32.mrb[28].mxu0 }
0x1873   :  { %v3140_v0 = vmul.f32 0.35355338, %v3058_v63  ;;  %v4155_v1 = vpop.f32.mrb[37].mxu1  ;;  %v4160_v2 = vpop.f32.mrb[29].mxu0  ;;  %v3811_v63 = vld [vmem:[%s5088_s5 + $0x30] sm:$0xff] }
0x1875   :  { %v3142_v3 = vsel %vm144_vm2, %v3140_v0, -inf }
0x1876   :  { %3143 = vmax.xlane.f32.xlu0 %v3142_v3  ;;  %v3136_v4 = vpop.f32.mrb[38].mxu1 }
0x1877   :  { %v3141_v6 = vmul.f32 0.35355338, %v3136_v4  ;;  %v4165_v11 = vpop.f32.mrb[39].mxu1 }
0x1879   :  { %v3145_v10 = vsel %vm144_vm2, %v3141_v6, -inf }
0x187a   :  { %3146 = vmax.xlane.f32.xlu1 %v3145_v10 }
0x188b   :  { %3164 = vrot.lane.b32.xlu1 %v4836_v21, %s4467_s12 }
0x188f   :  { %2634 = vrot.lane.b32.xlu1 %v4922_v28, %s4454_s28 }
0x1893   :  { %2636 = vrot.lane.b32.xlu1 %v4924_v30, %s4454_s28 }
0x1897   :  { %2978 = vrot.lane.b32.xlu1 %v2970_v62, %s5100_s0 }
0x1903   :  { %v3144_v8 = vpop.xlane.xlu0 %3143 }
0x1904   :  { %v3148_v12 = vsub.f32 %v3140_v0, %v3144_v8  ;;  %v3812_v0 = vld [vmem:[%s5088_s5 + $0x38] sm:$0xff] }
0x1905   :  { %v4277_v1 = vpack.c.bf16 %v3812_v0, %v3811_v63 }
0x1906   :  { %v3150_v13 = vmul.f32 1.442695, %v3148_v12  ;;  %v3806_v12 = vld [vmem:[%s5086_s3 + $0x1] ss:$0 sm:$0xff] }
0x1907   :  { %v3147_v14 = vpop.xlane.xlu1 %3146 }
0x1908   :  { %4384 = vpow2.f32 %v3150_v13  ;;  %v3149_v15 = vsub.f32 %v3141_v6, %v3147_v14  ;;  %v3808_v14 = vld [vmem:[%s5087_s4 + $0x1] ss:$0 sm:$0xff] }
0x190a   :  { %v3152_v16 = vmul.f32 1.442695, %v3149_v15 }
0x190b   :  { %v3165_v17 = vpop.permute.xlu1 %3164 }
0x190c   :  { %4386 = vpow2.f32 %v3152_v16  ;;  %4167 = vmatpush3.msra.mxu0 %v3165_v17 }
0x190f   :  { %v2635_v22 = vpop.permute.xlu1 %2634 }
0x1910   :  { %2640 = vst.msk [vmem:[#allocation2] sm:$0xff] %vm814_vm3, %v2635_v22 }
0x1912   :  { %v4385_v21 = vpop.eup %4384 }
0x1913   :  { %v2637_v23 = vpop.permute.xlu1 %2636  ;;  %v3154_v24 = vsel %vm144_vm2, %v4385_v21, 0.0 }
0x1914   :  { %2641 = vst.msk [vmem:[#allocation2 + $0x8] sm:$0xff] %vm814_vm3, %v2637_v23  ;;  %3155 = vadd.xlane.f32.xlu0 %v3154_v24  ;;  %v3817_v24 = vld [vmem:[%s5090_s7 + $0x40] sm:$0xff] }
0x1916   :  { %v4387_v25 = vpop.eup %4386 }
0x1917   :  { %v2979_v9 = vpop.permute.xlu1 %2978  ;;  %v3157_v26 = vsel %vm144_vm2, %v4387_v25, 0.0 }
0x1918   :  { %2983 = vst.msk [vmem:[#allocation2 + $0x8] sm:$0xff] %vm1157_vm4, %v2979_v9  ;;  %3158 = vadd.xlane.f32.xlu0 %v3157_v26  ;;  %v3819_v26 = vld [vmem:[%s5090_s7 + $0x50] sm:$0xff] }
0x192e   :  { %3240 = vrot.lane.b32.xlu0 %v4832_v20, %s4467_s12  ;;  %v3799_v20 = vld [vmem:[%s5085_s2 + $0x20] sm:$0xff] }
0x192f   :  { %v4265_v36 = vpack.c.bf16 %v3800_v35, %v3799_v20  ;;  %v3814_v20 = vld [vmem:[%s5089_s6 + $0x1] ss:$0 sm:$0xff] }
0x1931   :  { %4266 = vmatprep.subr.bf16.mxu0 %v4265_v36 }
0x1932   :  { %2976 = vrot.lane.b32.xlu0 %v2894_v60, %s5100_s0  ;;  %s4426_s0 = scalar_lea.vmem %s3720_s15, 256 }
0x1933   :  { %p4427_p8 = scmp.ne.s32.totalorder %s3720_s15, %s4426_s0  ;;  %p4432_p10 = scmp.lt.s32.totalorder %s4426_s0, %s4426_s0 }
0x1935   :  { %p4433_p11 = por %p4432_p10, %p4431_p9 }
0x1937   :  { %p4434_p12 = pnand %p4433_p11, %p4427_p8 }
0x19a1   :  { %v3156_v27 = vpop.xlane.xlu0 %3155 }
0x19a2   :  { %4388 = vrcp.f32 %v3156_v27  ;;  %v3820_v27 = vld [vmem:[%s5090_s7 + $0x58] sm:$0xff] }
0x19a5   :  { %v3159_v28 = vpop.xlane.xlu0 %3158 }
0x19a6   :  { %4390 = vrcp.f32 %v3159_v28  ;;  %v4285_v28 = vpack.c.bf16 %v3820_v27, %v3819_v26 }
0x19a9   :  { %v3241_v29 = vpop.permute.xlu0 %3240 }
0x19aa   :  { %4172 = vmatpush3.msra.mxu1 %v3241_v29  ;;  %v3821_v29 = vld [vmem:[%s5090_s7 + $0x60] sm:$0xff] }
0x19ac   :  { %v4389_v30 = vpop.eup %4388 }
0x19ad   :  { %v3162_v31 = vmul.f32 %v4389_v30, %v4385_v21  ;;  %v2977_v32 = vpop.permute.xlu0 %2976  ;;  %v3822_v30 = vld [vmem:[%s5090_s7 + $0x68] sm:$0xff] }
0x19ae   :  { %2982 = vst.msk [vmem:[#allocation2] sm:$0xff] %vm1157_vm4, %v2977_v32  ;;  %v3823_v32 = vld [vmem:[%s5090_s7 + $0x70] sm:$0xff] }
0x19af   :  { %4169 = vmatmul.mubr.msk.f32.vlgmr.msra.gmra.mrb[30].mxu0 %vm144_vm2, %v3162_v31  ;;  %v4289_v31 = vpack.c.bf16 %v3822_v30, %v3821_v29 }
0x19b0   :  { %v4391_v33 = vpop.eup %4390  ;;  %4268 = vmatpush3.bf16.msra.mxu0 %v4265_v36 }
0x19b1   :  { %v3163_v34 = vmul.f32 %v4391_v33, %v4387_v25  ;;  %4270 = vmatprep.subr.bf16.mxu0 %v4269_v39  ;;  %v3818_v25 = vld [vmem:[%s5090_s7 + $0x48] sm:$0xff]  ;;  %v3824_v33 = vld [vmem:[%s5090_s7 + $0x78] sm:$0xff] }
0x19b2   :  { %v4281_v9 = vpack.c.bf16 %v3818_v25, %v3817_v24 }
0x19b3   :  { %4174 = vmatmul.mubr.msk.f32.vlgmr.msra.gmra.mrb[40].mxu1 %vm144_vm2, %v3163_v34  ;;  %v4293_v34 = vpack.c.bf16 %v3824_v33, %v3823_v32 }
0x19b4   :  { %4272 = vmatpush3.bf16.msra.mxu0 %v4269_v39 }
0x19b5   :  { %4282 = vmatprep.subr.bf16.mxu0 %v4281_v9 }
0x1a82   :  { %v3236_v40 = vpop.f32.mrb[30].mxu0 }
0x1a83   :  { %3318 = vrot.lane.b32.xlu0 %v3236_v40, %s5101_s30  ;;  %v4170_v41 = vpop.f32.mrb[31].mxu0 }
0x1a86   :  { %v3312_v42 = vpop.f32.mrb[40].mxu1 }
0x1a87   :  { %3320 = vrot.lane.b32.xlu1 %v3312_v42, %s5101_s30  ;;  %v4175_v43 = vpop.f32.mrb[41].mxu1 }
0x1af5   :  { %v3319_v44 = vpop.permute.xlu0 %3318 }
0x1af6   :  { %3324 = vst.msk [vmem:[#allocation2] sm:$0xff] %vm1500_vm5, %v3319_v44 }
0x1af9   :  { %v3321_v45 = vpop.permute.xlu1 %3320 }
0x1afa   :  { %3325 = vst.msk [vmem:[#allocation2 + $0x8] sm:$0xff] %vm1500_vm5, %v3321_v45 }
0x1afd   :  { %v3326_v46 = vld [vmem:[#allocation2] sm:$0xff] }
0x1afe   :  { %4184 = vmatprep.mubr.msk.f32.mxu0 %vm59_vm0, %v3326_v46 }
0x1b01   :  { %v3327_v47 = vld [vmem:[#allocation2 + $0x8] sm:$0xff] }
0x1b02   :  { %4185 = vmatmul.mubr.msk.f32.vlgmr.msra.gmra.mrb[32].mxu0 %vm59_vm0, %v3327_v47 }
0x1b03   :  { %4284 = vmatpush3.bf16.msra.mxu0 %v4281_v9 }
0x1b04   :  { %4286 = vmatprep.subr.bf16.mxu0 %v4285_v28 }
0x1b07   :  { %4288 = vmatpush3.bf16.msra.mxu0 %v4285_v28 }
0x1b08   :  { %4290 = vmatprep.subr.bf16.mxu0 %v4289_v31 }
0x1b0b   :  { %4292 = vmatpush3.bf16.msra.mxu0 %v4289_v31 }
0x1b0c   :  { %4294 = vmatprep.subr.bf16.mxu0 %v4293_v34 }
0x1b0f   :  { %4296 = vmatpush3.bf16.msra.mxu0 %v4293_v34 }
0x1bd5   :  { %v4186_v48 = vpop.f32.mrb[32].mxu0 }
0x1bd6   :  { %v3415_v49 = vadd.f32 %v4186_v48, %v4824_v19  ;;  %v3405_v50 = vpop.f32.mrb[33].mxu0 }
0x1bd7   :  { %v3414_v51 = vadd.f32 %v3405_v50, %v4822_v18  ;;  %v3809_v18 = vld [vmem:[%s5088_s5 + $0x20] sm:$0xff] }
0x1bd8   :  { %v3419_v52 = vsel %vm59_vm0, %v3415_v49, 0.0  ;;  %v4273_v62 = vpack.c.bf16 %v3810_v61, %v3809_v18 }
0x1bd9   :  { %3420 = vadd.xlane.f32.xlu1 %v3419_v52  ;;  %v3416_v53 = vsel %vm59_vm0, %v3414_v51, 0.0 }
0x1bda   :  { %3417 = vadd.xlane.f32.xlu0 %v3416_v53  ;;  %4274 = vmatprep.subr.bf16.mxu1 %v4273_v62 }
0x1bdb   :  { %4276 = vmatpush3.bf16.msra.mxu1 %v4273_v62 }
0x1bdc   :  { %4278 = vmatprep.subr.bf16.mxu1 %v4277_v1 }
0x1bdf   :  { %4280 = vmatpush3.bf16.msra.mxu1 %v4277_v1 }
0x1c66   :  { %v3421_v7 = vpop.xlane.xlu1 %3420 }
0x1c67   :  { %v3423_v5 = vmul.f32 0.03125, %v3421_v7  ;;  %v3418_v54 = vpop.xlane.xlu0 %3417 }
0x1c68   :  { %v3422_v55 = vmul.f32 0.03125, %v3418_v54 }
0x1c69   :  { %v3425_v56 = vsub.f32 %v3415_v49, %v3423_v5  ;;  %v3826_v49 = vld [vmem:[%s5091_s8 + $0x1] ss:$0 sm:$0xff] }
0x1c6a   :  { %v3424_v57 = vsub.f32 %v3414_v51, %v3422_v55 }
0x1c6b   :  { %v3427_v60 = vmul.f32 %v3425_v56, %v3425_v56 }
0x1c6c   :  { %v3426_v58 = vmul.f32 %v3424_v57, %v3424_v57 }
0x1c6d   :  { %v3431_v19 = vsel %vm59_vm0, %v3427_v60, 0.0 }
0x1c6e   :  { %v3428_v59 = vsel %vm59_vm0, %v3426_v58, 0.0 }
0x1c6f   :  { %3429 = vadd.xlane.f32.xlu0 %v3428_v59 }
0x1c73   :  { %3432 = vadd.xlane.f32.xlu0 %v3431_v19 }
0x1cfc   :  { %v3430_v2 = vpop.xlane.xlu0 %3429 }
0x1cfd   :  { %v3434_v3 = vmul.f32 0.03125, %v3430_v2 }
0x1cff   :  { %v3436_v4 = vadd.f32 1e-05, %v3434_v3 }
0x1d00   :  { %v3433_v6 = vpop.xlane.xlu0 %3432 }
0x1d01   :  { %4392 = vrsqrt.f32 %v3436_v4  ;;  %v3435_v11 = vmul.f32 0.03125, %v3433_v6 }
0x1d03   :  { %v3437_v10 = vadd.f32 1e-05, %v3435_v11 }
0x1d05   :  { %4394 = vrsqrt.f32 %v3437_v10  ;;  %v3830_v10 = vld [vmem:[%s5092_s9 + $0x1] ss:$0 sm:$0xff] }
0x1d0b   :  { %v4393_v8 = vpop.eup %4392 }
0x1d0c   :  { %v3440_v13 = vmul.f32 %v4393_v8, %v3424_v57 }
0x1d0e   :  { %v3450_v15 = vmul.f32 %v3806_v12, %v3440_v13 }
0x1d0f   :  { %v4395_v16 = vpop.eup %4394 }
0x1d10   :  { %v3441_v17 = vmul.f32 %v4395_v16, %v3425_v56  ;;  %v3460_v22 = vadd.f32 %v3808_v14, %v3450_v15 }
0x1d12   :  { %v3451_v21 = vmul.f32 %v3806_v12, %v3441_v17  ;;  %4195 = vmatprep.mubr.msk.f32.mxu1 %vm59_vm0, %v3460_v22 }
0x1d14   :  { %v3461_v23 = vadd.f32 %v3808_v14, %v3451_v21  ;;  %v3832_v14 = vld [vmem:[%s5093_s10 + $0x1] ss:$0 sm:$0xff] }
0x1d16   :  { %4196 = vmatmul.mubr.msk.f32.vlgmr.msra.gmra.mrb[42].mxu1 %vm59_vm0, %v3461_v23 }
0x1de9   :  { %v4197_v35 = vpop.f32.mrb[42].mxu1 }
0x1dea   :  { %v3553_v36 = vadd.f32 %v4197_v35, %v3814_v20  ;;  %v3547_v37 = vpop.f32.mrb[43].mxu1 }
0x1deb   :  { %v3548_v38 = vadd.f32 %v3814_v20, %v3547_v37 }
0x1dec   :  { %v3559_v39 = vmul.f32 0.70710677, %v3553_v36  ;;  %v3557_v46 = vmul.f32 0.5, %v3553_v36 }
0x1ded   :  { %v3558_v40 = vmul.f32 0.70710677, %v3548_v38  ;;  %v3556_v44 = vmul.f32 0.5, %v3548_v38 }
0x1dee   :  { %4396 = verf.f32 %v3559_v39 }
0x1def   :  { %4398 = verf.f32 %v3558_v40 }
0x1df8   :  { %v4397_v41 = vpop.eup %4396 }
0x1df9   :  { %v4399_v42 = vpop.eup %4398  ;;  %v3563_v43 = vadd.f32 1.0, %v4397_v41 }
0x1dfa   :  { %v3562_v45 = vadd.f32 1.0, %v4399_v42 }
0x1dfb   :  { %v3565_v48 = vmul.f32 %v3563_v43, %v3557_v46 }
0x1dfc   :  { %v3564_v47 = vmul.f32 %v3562_v45, %v3556_v44 }
0x1dfe   :  { %4214 = vmatprep.mubr.msk.f32.mxu0 %vm1754_vm6, %v3564_v47 }
0x1dff   :  { %4215 = vmatmul.mubr.msk.f32.vlgmr.msra.gmra.mrb[34].mxu0 %vm1754_vm6, %v3565_v48 }
0x1ed2   :  { %v4216_v50 = vpop.f32.mrb[34].mxu0 }
0x1ed3   :  { %v3661_v51 = vadd.f32 %v4216_v50, %v3826_v49  ;;  %v3655_v52 = vpop.f32.mrb[35].mxu0 }
0x1ed4   :  { %v3656_v53 = vadd.f32 %v3826_v49, %v3655_v52 }
0x1ed5   :  { %v3665_v7 = vadd.f32 %v3661_v51, %v3461_v23 }
0x1ed6   :  { %v3664_v5 = vadd.f32 %v3656_v53, %v3460_v22 }
0x1ed7   :  { %v3669_v54 = vsel %vm59_vm0, %v3665_v7, 0.0 }
0x1ed8   :  { %3670 = vadd.xlane.f32.xlu0 %v3669_v54  ;;  %v3666_v55 = vsel %vm59_vm0, %v3664_v5, 0.0 }
0x1ed9   :  { %3667 = vadd.xlane.f32.xlu1 %v3666_v55 }
0x1f65   :  { %v3671_v56 = vpop.xlane.xlu0 %3670 }
0x1f66   :  { %v3673_v57 = vmul.f32 0.03125, %v3671_v56  ;;  %v3668_v58 = vpop.xlane.xlu1 %3667 }
0x1f67   :  { %v3672_v59 = vmul.f32 0.03125, %v3668_v58 }
0x1f68   :  { %v3675_v60 = vsub.f32 %v3665_v7, %v3673_v57 }
0x1f69   :  { %v3674_v19 = vsub.f32 %v3664_v5, %v3672_v59 }
0x1f6a   :  { %v3677_v18 = vmul.f32 %v3675_v60, %v3675_v60 }
0x1f6b   :  { %v3676_v61 = vmul.f32 %v3674_v19, %v3674_v19 }
0x1f6c   :  { %v3681_v62 = vsel %vm59_vm0, %v3677_v18, 0.0 }
0x1f6d   :  { %3682 = vadd.xlane.f32.xlu0 %v3681_v62  ;;  %v3678_v63 = vsel %vm59_vm0, %v3676_v61, 0.0 }
0x1f6e   :  { %3679 = vadd.xlane.f32.xlu1 %v3678_v63 }
0x1ffa   :  { %v3683_v0 = vpop.xlane.xlu0 %3682 }
0x1ffb   :  { %v3685_v1 = vmul.f32 0.03125, %v3683_v0  ;;  %v3680_v2 = vpop.xlane.xlu1 %3679 }
0x1ffc   :  { %v3684_v3 = vmul.f32 0.03125, %v3680_v2 }
0x1ffd   :  { %v3687_v4 = vadd.f32 1e-05, %v3685_v1 }
0x1ffe   :  { %v3686_v6 = vadd.f32 1e-05, %v3684_v3 }
0x1fff   :  { %4400 = vrsqrt.f32 %v3687_v4 }
0x2000   :  { %4402 = vrsqrt.f32 %v3686_v6 }
0x2009   :  { %v4401_v11 = vpop.eup %4400 }
0x200a   :  { %v4403_v8 = vpop.eup %4402  ;;  %v3691_v12 = vmul.f32 %v4401_v11, %v3675_v60 }
0x200b   :  { %v3690_v13 = vmul.f32 %v4403_v8, %v3674_v19 }
0x200c   :  { %v3701_v15 = vmul.f32 %v3830_v10, %v3691_v12 }
0x200d   :  { %v3700_v16 = vmul.f32 %v3830_v10, %v3690_v13 }
0x200e   :  { %v3711_v17 = vadd.f32 %v3832_v14, %v3701_v15 }
0x200f   :  { %v3710_v22 = vadd.f32 %v3832_v14, %v3700_v16 }
0x2010   :  { %3713 = vst.msk [vmem:[#allocation6 + $0x8] sm:$0xff] %vm59_vm0, %v3711_v17 }
0x2011   :  { %3712 = vst.msk [vmem:[#allocation6] sm:$0xff] %vm59_vm0, %v3710_v22 }
0x2012   :  { %4437 = shalt.err (!%p4434_p12)
}
0x2013   :  { %s4438_s5 = scalar_lea.hbm %s5094_s11, 256 }
0x2014   :  { %p4439_p13 = scmp.ne.s32.totalorder %s5094_s11, %s4438_s5  ;;  %p4442_p0 = scmp.lt.u32.totalorder %s4438_s5, %s5094_s11 }
0x2016   :  { %p4444_p1 = pnand %p4442_p0, %p4439_p13 }
0x2018   :  { %4447 = shalt.err (!%p4444_p1)
}
0x2019   :  { %s5102_s22 = smov 128  }
0x201a   :  { %3725 = dma.vmem_to_hbm [thread:$0]  %s3720_s15, 256, %s5094_s11, [#allocation5], %s5102_s22, %s5102_s22, %s4454_s28  }
0x201b   :  { %4450 = dma.done.wait [#allocation5], 256  }
0x201c   :  { %4451 = vsyncadd [#allocation5], 4294967040 }
0x201d   :  { %3729 = vsyncpa [#allocation4], 1 }
0x201e   :  { %3730 = vsyncpa [#allocation5], 1 }

</bundles_post_ra>
